<compile_context>
chip_gen: v7x
topology: tpu7x:2x2x1
jax: 0.10.0
libtpu: 0.0.40
codegen_flags: <defaults>
</compile_context>

<pallas_src>
import functools

import numpy as np
import jax
import jax.numpy as jnp
from jax import lax
from jax.experimental import pallas as pl
from jax.experimental.pallas import tpu as pltpu


def fold_bn(gamma, beta, mean, var, eps=1e-5):
    s = gamma / jnp.sqrt(var + eps)
    b = beta - mean * s
    return s, b


# ----------------------------- Pallas kernel ------------------------------ #
def _cot_kernel(h, w, c, ks, bblk,
                xpad_ref,                    # (bblk, h+2p, w+2p, c)  compute dtype
                wkey_ref, bkey_ref,          # (ks*ks*c, c) cd, (1, c) f32
                wval_ref, bval_ref,          # (c, c) cd,       (1, c) f32
                w1k_ref, w1x_ref, b1_ref,    # (c, hid) cd x2,  (1, hid) f32
                w2_ref, b2_ref,              # (hid, c) cd,     (1, c) f32
                out_ref):                    # (bblk, hw, c) f32
    hw = h * w
    pad = ks // 2
    m = bblk * hw
    cd = wkey_ref.dtype

    # In-kernel "im2col": the ks*ks taps are shifted windows of the padded
    # input already resident in VMEM (f32 for layout-trivial reshapes).
    taps = []
    for ky in range(ks):
        for kx in range(ks):
            win = xpad_ref[:, ky:ky + h, kx:kx + w, :]          # (bblk, h, w, c)
            taps.append(win.astype(jnp.float32).reshape(m, c))
    x_flat = taps[pad * ks + pad].astype(cd)                    # centre tap == x
    taps = jnp.concatenate(taps, axis=-1).astype(cd)            # (M, ks*ks*C)

    # key_embed: grouped 3x3 conv (block-diagonal dense weight, BN folded)
    # as ONE deep-contraction MXU matmul, then ReLU.
    # TODO(synk): for C/groups >= 128 switch to per-group matmuls to avoid the
    #             4x zero padding of the block-diagonal dense weight.
    k1 = jnp.dot(taps, wkey_ref[...], preferred_element_type=jnp.float32)
    k1 = jnp.maximum(k1 + bkey_ref[...], 0.0)                   # (M, C) f32

    # value_embed: 1x1 conv + folded BN.
    v = jnp.dot(x_flat, wval_ref[...],
                preferred_element_type=jnp.float32) + bval_ref[...]

    # attention_embed(cat([k1, x])) without materialising the concat:
    # the first 1x1-conv weight is pre-split into its k1 / x halves.
    a1 = (jnp.dot(k1.astype(cd), w1k_ref[...], preferred_element_type=jnp.float32)
          + jnp.dot(x_flat, w1x_ref[...], preferred_element_type=jnp.float32)
          + b1_ref[...])
    a1 = jnp.maximum(a1, 0.0)
    # second 1x1 conv; the mean over the ks*ks attention taps is an exact
    # linear fold, so w2_ref / b2_ref are already tap-averaged -> (M, C).
    att = jnp.dot(a1.astype(cd), w2_ref[...],
                  preferred_element_type=jnp.float32) + b2_ref[...]

    # softmax over the spatial (HW) axis per (batch, channel), then scale v.
    # TODO(synk): for large H*W add an HW grid axis + online softmax so only a
    #             tile (not the whole feature map) must fit v7x's 64 MiB VMEM.
    att = att.reshape(bblk, hw, c)
    att = att - jnp.max(att, axis=1, keepdims=True)
    e = jnp.exp(att)
    inv = pl.reciprocal(jnp.sum(e, axis=1, keepdims=True), approx=True)
    out_ref[...] = (k1.reshape(bblk, hw, c)
                    + (e * inv) * v.reshape(bblk, hw, c)).astype(out_ref.dtype)


# ------------------------------- wrapper ----------------------------------- #
def cot_attention_pallas(x_nchw, kern_params, kernel_size=3, batch_block=1,
                         compute_dtype=jnp.bfloat16):
    bs, c, h, w = x_nchw.shape
    ks = kernel_size
    pad = ks // 2
    hw = h * w
    hp, wp = h + 2 * pad, w + 2 * pad
    assert bs % batch_block == 0
    nblk = bs // batch_block

    (wkey, bkey, wval, bval, w1k, w1x, b1, w2m, b2m) = kern_params
    hid = w1k.shape[1]
    cd = jnp.dtype(compute_dtype)

    # channels-last + zero pad on the host (cheap glue); activations go over
    # HBM in the compute dtype (bf16 halves the traffic of the only big input).
    # TODO(synk): for C < 128 the lane axis is under-filled; a lane-packing
    #             layout (C padded / folded to 128) is left unimplemented.
    x_nhwc = jnp.transpose(x_nchw, (0, 2, 3, 1))
    x_pad = jnp.pad(x_nhwc, ((0, 0), (pad, pad), (pad, pad), (0, 0))).astype(cd)

    wkey_c = wkey.astype(cd)
    wval_c = wval.astype(cd)
    w1k_c = w1k.astype(cd)
    w1x_c = w1x.astype(cd)
    w2_c = w2m.astype(cd)

    flops = 2 * bs * hw * (ks * ks * c * c + c * c + 2 * c * hid + hid * c)
    bytes_accessed = (bs * hp * wp * c * cd.itemsize                    # input
                      + bs * hw * c * 4                                 # output
                      + (ks * ks * c * c + c * c + 2 * c * hid + hid * c) * cd.itemsize
                      + (3 * c + hid) * 4)                              # biases
    cost = pl.CostEstimate(flops=int(flops),
                           transcendentals=int(bs * hw * c),
                           bytes_accessed=int(bytes_accessed))

    kern = functools.partial(_cot_kernel, h, w, c, ks, batch_block)
    out = pl.pallas_call(
        kern,
        out_shape=jax.ShapeDtypeStruct((bs, hw, c), jnp.float32),
        grid=(nblk,),
        in_specs=[
            pl.BlockSpec((batch_block, hp, wp, c), lambda b: (b, 0, 0, 0)),
            pl.BlockSpec((ks * ks * c, c), lambda b: (0, 0)),
            pl.BlockSpec((1, c), lambda b: (0, 0)),
            pl.BlockSpec((c, c), lambda b: (0, 0)),
            pl.BlockSpec((1, c), lambda b: (0, 0)),
            pl.BlockSpec((c, hid), lambda b: (0, 0)),
            pl.BlockSpec((c, hid), lambda b: (0, 0)),
            pl.BlockSpec((1, hid), lambda b: (0, 0)),
            pl.BlockSpec((hid, c), lambda b: (0, 0)),
            pl.BlockSpec((1, c), lambda b: (0, 0)),
        ],
        out_specs=pl.BlockSpec((batch_block, hw, c), lambda b: (b, 0, 0)),
        # batch blocks are independent -> "parallel" lets v7x's two TCs split them
        compiler_params=pltpu.CompilerParams(dimension_semantics=("parallel",)),
        cost_estimate=cost,
    )(x_pad, wkey_c, bkey, wval_c, bval, w1k_c, w1x_c, b1, w2_c, b2m)

    return out.reshape(bs, h, w, c).transpose(0, 3, 1, 2)   # back to NCHW


# ------------------------ deterministic parameters ------------------------- #
def make_params(key, dim, kernel_size=3, groups=4, factor=4, eps=1e-5):
    ks = kernel_size
    cg = dim // groups
    hid = 2 * dim // factor
    keys = jax.random.split(key, 17)

    # PyTorch-shaped weights
    w_key_pt = 0.1 * jax.random.normal(keys[0], (dim, cg, ks, ks), jnp.float32)
    w_val_pt = 0.1 * jax.random.normal(keys[1], (dim, dim), jnp.float32)      # 1x1
    w1_pt = 0.1 * jax.random.normal(keys[2], (hid, 2 * dim), jnp.float32)     # 1x1
    w2_pt = 0.1 * jax.random.normal(keys[3], (ks * ks * dim, hid), jnp.float32)
    b2_pt = 0.1 * jax.random.normal(keys[4], (ks * ks * dim,), jnp.float32)

    def bn_params(k4, n):
        kg, kb, km, kv = k4
        gamma = 1.0 + 0.1 * jax.random.normal(kg, (n,), jnp.float32)
        beta = 0.05 * jax.random.normal(kb, (n,), jnp.float32)
        mean = 0.1 * jax.random.normal(km, (n,), jnp.float32)
        var = 0.5 + 0.5 * jnp.abs(jax.random.normal(kv, (n,), jnp.float32))
        return gamma, beta, mean, var

    bn_k = bn_params(keys[5:9], dim)
    bn_v = bn_params(keys[9:13], dim)
    bn_1 = bn_params(keys[13:17], hid)

    sk, bkf = fold_bn(*bn_k, eps)
    sv, bvf = fold_bn(*bn_v, eps)
    s1, b1f = fold_bn(*bn_1, eps)

    # grouped conv weight -> block-diagonal dense per tap, BN scale folded in,
    # flattened to (ks*ks*dim, dim) so key_embed is a single deep matmul.
    wk_np = np.asarray(w_key_pt)
    wkey_dense = np.zeros((ks * ks, dim, dim), np.float32)
    for o in range(dim):
        g = o // cg
        for i in range(cg):
            for ky in range(ks):
                for kx in range(ks):
                    wkey_dense[ky * ks + kx, g * cg + i, o] = wk_np[o, i, ky, kx]
    wkey = (jnp.asarray(wkey_dense) * sk[None, None, :]).reshape(ks * ks * dim, dim)
    bkey = bkf.reshape(1, dim)

    wval = w_val_pt.T * sv[None, :]
    bval = bvf.reshape(1, dim)

    # first attention 1x1 conv, pre-split into k1 / x halves (no in-kernel concat)
    w1k = w1_pt[:, :dim].T * s1[None, :]
    w1x = w1_pt[:, dim:].T * s1[None, :]
    b1 = b1f.reshape(1, hid)

    # fold the mean over the ks*ks attention taps into the last 1x1 conv
    w2m = w2_pt.T.reshape(hid, dim, ks * ks).mean(axis=-1)
    b2m = b2_pt.reshape(dim, ks * ks).mean(axis=-1).reshape(1, dim)

    pt_params = (w_key_pt, w_val_pt, w1_pt, w2_pt, b2_pt, bn_k, bn_v, bn_1)
    kern_params = (wkey, bkey, wval, bval, w1k, w1x, b1, w2m, b2m)
    return pt_params, kern_params


# ------------------------- pure-JAX reference (NCHW) ------------------------ #
def reference_cot(x, pt_params, kernel_size=3, groups=4, eps=1e-5):
    (w_key_pt, w_val_pt, w1_pt, w2_pt, b2_pt, bn_k, bn_v, bn_1) = pt_params
    bs, c, h, w = x.shape
    ks = kernel_size
    sk, bkf = fold_bn(*bn_k, eps)
    sv, bvf = fold_bn(*bn_v, eps)
    s1, b1f = fold_bn(*bn_1, eps)

    k1 = lax.conv_general_dilated(x, w_key_pt, (1, 1), 'SAME',
                                  feature_group_count=groups,
                                  dimension_numbers=('NCHW', 'OIHW', 'NCHW'))
    k1 = jnp.maximum(k1 * sk[None, :, None, None] + bkf[None, :, None, None], 0.0)

    v = jnp.einsum('bchw,oc->bohw', x, w_val_pt)
    v = (v * sv[None, :, None, None] + bvf[None, :, None, None]).reshape(bs, c, h * w)

    y = jnp.concatenate([k1, x], axis=1)
    a1 = jnp.einsum('bchw,oc->bohw', y, w1_pt)
    a1 = jnp.maximum(a1 * s1[None, :, None, None] + b1f[None, :, None, None], 0.0)
    att = jnp.einsum('bchw,oc->bohw', a1, w2_pt) + b2_pt[None, :, None, None]
    att = att.reshape(bs, c, ks * ks, h, w).mean(axis=2).reshape(bs, c, h * w)

    k2 = jax.nn.softmax(att, axis=-1) * v
    return k1 + k2.reshape(bs, c, h, w)


if __name__ == "__main__":
    dim, ks, bs, h, w = 8, 3, 2, 8, 8   # dim must be divisible by groups=4
    key = jax.random.PRNGKey(0)
    kx, kp = jax.random.split(key)
    x = jax.random.normal(kx, (bs, dim, h, w), jnp.float32)

    pt_params, kern_params = make_params(kp, dim, ks)

    out = cot_attention_pallas(x, kern_params, kernel_size=ks, batch_block=1)
    out = jax.block_until_ready(out)

    ref = reference_cot(x, pt_params, kernel_size=ks)
    assert out.shape == (bs, dim, h, w)
    # bf16 MXU inputs with f32 accumulation -> loosened comparison tolerance
    np.testing.assert_allclose(np.asarray(out), np.asarray(ref),
                               rtol=3e-2, atol=3e-2)
    print("KERNEL_OK")
</pallas_src>

<mosaic_0001>
module attributes {stable_mosaic.version = 11 : i64} {
  func.func @_cot_kernel(%arg0: i32, %arg1: memref<1x10x10x8xbf16, #tpu.memory_space<vmem>>, %arg2: memref<72x8xbf16, #tpu.memory_space<vmem>>, %arg3: memref<1x8xf32, #tpu.memory_space<vmem>>, %arg4: memref<8x8xbf16, #tpu.memory_space<vmem>>, %arg5: memref<1x8xf32, #tpu.memory_space<vmem>>, %arg6: memref<8x4xbf16, #tpu.memory_space<vmem>>, %arg7: memref<8x4xbf16, #tpu.memory_space<vmem>>, %arg8: memref<1x4xf32, #tpu.memory_space<vmem>>, %arg9: memref<4x8xbf16, #tpu.memory_space<vmem>>, %arg10: memref<1x8xf32, #tpu.memory_space<vmem>>, %arg11: memref<1x64x8xf32, #tpu.memory_space<vmem>>) attributes {dimension_semantics = [#tpu.dimension_semantics<parallel>], iteration_bounds = array<i64: 2>, scalar_prefetch = 0 : i64, scratch_operands = 0 : i64, tpu.core_type = #tpu.core_type<tc>, window_params = [{transform_indices = @transform_0, window_bounds = array<i64: 1, 10, 10, 8>}, {pipeline_mode = #tpu.pipeline_mode<synchronous>, transform_indices = @transform_1, window_bounds = array<i64: 72, 8>}, {pipeline_mode = #tpu.pipeline_mode<synchronous>, transform_indices = @transform_2, window_bounds = array<i64: 1, 8>}, {pipeline_mode = #tpu.pipeline_mode<synchronous>, transform_indices = @transform_3, window_bounds = array<i64: 8, 8>}, {pipeline_mode = #tpu.pipeline_mode<synchronous>, transform_indices = @transform_4, window_bounds = array<i64: 1, 8>}, {pipeline_mode = #tpu.pipeline_mode<synchronous>, transform_indices = @transform_5, window_bounds = array<i64: 8, 4>}, {pipeline_mode = #tpu.pipeline_mode<synchronous>, transform_indices = @transform_6, window_bounds = array<i64: 8, 4>}, {pipeline_mode = #tpu.pipeline_mode<synchronous>, transform_indices = @transform_7, window_bounds = array<i64: 1, 4>}, {pipeline_mode = #tpu.pipeline_mode<synchronous>, transform_indices = @transform_8, window_bounds = array<i64: 4, 8>}, {pipeline_mode = #tpu.pipeline_mode<synchronous>, transform_indices = @transform_9, window_bounds = array<i64: 1, 8>}, {transform_indices = @transform_10, window_bounds = array<i64: 1, 64, 8>}]} {
    %c0 = arith.constant 0 : index
    %c0_0 = arith.constant 0 : index
    %c0_1 = arith.constant 0 : index
    %c0_2 = arith.constant 0 : index
    %0 = vector.load %arg1[%c0, %c0_0, %c0_1, %c0_2] : memref<1x10x10x8xbf16, #tpu.memory_space<vmem>>, vector<1x8x8x8xbf16>
    %1 = arith.extf %0 : vector<1x8x8x8xbf16> to vector<1x8x8x8xf32>
    %2 = vector.shape_cast %1 : vector<1x8x8x8xf32> to vector<64x8xf32>
    %c0_3 = arith.constant 0 : index
    %c0_4 = arith.constant 0 : index
    %c1 = arith.constant 1 : index
    %c0_5 = arith.constant 0 : index
    %3 = vector.load %arg1[%c0_3, %c0_4, %c1, %c0_5] : memref<1x10x10x8xbf16, #tpu.memory_space<vmem>>, vector<1x8x8x8xbf16>
    %4 = arith.extf %3 : vector<1x8x8x8xbf16> to vector<1x8x8x8xf32>
    %5 = vector.shape_cast %4 : vector<1x8x8x8xf32> to vector<64x8xf32>
    %c0_6 = arith.constant 0 : index
    %c0_7 = arith.constant 0 : index
    %c2 = arith.constant 2 : index
    %c0_8 = arith.constant 0 : index
    %6 = vector.load %arg1[%c0_6, %c0_7, %c2, %c0_8] : memref<1x10x10x8xbf16, #tpu.memory_space<vmem>>, vector<1x8x8x8xbf16>
    %7 = arith.extf %6 : vector<1x8x8x8xbf16> to vector<1x8x8x8xf32>
    %8 = vector.shape_cast %7 : vector<1x8x8x8xf32> to vector<64x8xf32>
    %c0_9 = arith.constant 0 : index
    %c1_10 = arith.constant 1 : index
    %c0_11 = arith.constant 0 : index
    %c0_12 = arith.constant 0 : index
    %9 = vector.load %arg1[%c0_9, %c1_10, %c0_11, %c0_12] : memref<1x10x10x8xbf16, #tpu.memory_space<vmem>>, vector<1x8x8x8xbf16>
    %10 = arith.extf %9 : vector<1x8x8x8xbf16> to vector<1x8x8x8xf32>
    %11 = vector.shape_cast %10 : vector<1x8x8x8xf32> to vector<64x8xf32>
    %c0_13 = arith.constant 0 : index
    %c1_14 = arith.constant 1 : index
    %c1_15 = arith.constant 1 : index
    %c0_16 = arith.constant 0 : index
    %12 = vector.load %arg1[%c0_13, %c1_14, %c1_15, %c0_16] : memref<1x10x10x8xbf16, #tpu.memory_space<vmem>>, vector<1x8x8x8xbf16>
    %13 = arith.extf %12 : vector<1x8x8x8xbf16> to vector<1x8x8x8xf32>
    %14 = vector.shape_cast %13 : vector<1x8x8x8xf32> to vector<64x8xf32>
    %c0_17 = arith.constant 0 : index
    %c1_18 = arith.constant 1 : index
    %c2_19 = arith.constant 2 : index
    %c0_20 = arith.constant 0 : index
    %15 = vector.load %arg1[%c0_17, %c1_18, %c2_19, %c0_20] : memref<1x10x10x8xbf16, #tpu.memory_space<vmem>>, vector<1x8x8x8xbf16>
    %16 = arith.extf %15 : vector<1x8x8x8xbf16> to vector<1x8x8x8xf32>
    %17 = vector.shape_cast %16 : vector<1x8x8x8xf32> to vector<64x8xf32>
    %c0_21 = arith.constant 0 : index
    %c2_22 = arith.constant 2 : index
    %c0_23 = arith.constant 0 : index
    %c0_24 = arith.constant 0 : index
    %18 = vector.load %arg1[%c0_21, %c2_22, %c0_23, %c0_24] : memref<1x10x10x8xbf16, #tpu.memory_space<vmem>>, vector<1x8x8x8xbf16>
    %19 = arith.extf %18 : vector<1x8x8x8xbf16> to vector<1x8x8x8xf32>
    %20 = vector.shape_cast %19 : vector<1x8x8x8xf32> to vector<64x8xf32>
    %c0_25 = arith.constant 0 : index
    %c2_26 = arith.constant 2 : index
    %c1_27 = arith.constant 1 : index
    %c0_28 = arith.constant 0 : index
    %21 = vector.load %arg1[%c0_25, %c2_26, %c1_27, %c0_28] : memref<1x10x10x8xbf16, #tpu.memory_space<vmem>>, vector<1x8x8x8xbf16>
    %22 = arith.extf %21 : vector<1x8x8x8xbf16> to vector<1x8x8x8xf32>
    %23 = vector.shape_cast %22 : vector<1x8x8x8xf32> to vector<64x8xf32>
    %c0_29 = arith.constant 0 : index
    %c2_30 = arith.constant 2 : index
    %c2_31 = arith.constant 2 : index
    %c0_32 = arith.constant 0 : index
    %24 = vector.load %arg1[%c0_29, %c2_30, %c2_31, %c0_32] : memref<1x10x10x8xbf16, #tpu.memory_space<vmem>>, vector<1x8x8x8xbf16>
    %25 = arith.extf %24 : vector<1x8x8x8xbf16> to vector<1x8x8x8xf32>
    %26 = vector.shape_cast %25 : vector<1x8x8x8xf32> to vector<64x8xf32>
    %27 = arith.truncf %14 : vector<64x8xf32> to vector<64x8xbf16>
    %28 = tpu.concatenate %2, %5, %8, %11, %14, %17, %20, %23, %26 in 1 : vector<64x8xf32>, vector<64x8xf32>, vector<64x8xf32>, vector<64x8xf32>, vector<64x8xf32>, vector<64x8xf32>, vector<64x8xf32>, vector<64x8xf32>, vector<64x8xf32> -> vector<64x72xf32>
    %29 = arith.truncf %28 : vector<64x72xf32> to vector<64x72xbf16>
    %c0_33 = arith.constant 0 : index
    %c0_34 = arith.constant 0 : index
    %30 = vector.load %arg2[%c0_33, %c0_34] : memref<72x8xbf16, #tpu.memory_space<vmem>>, vector<72x8xbf16>
    %cst = arith.constant dense<0.000000e+00> : vector<64x8xf32>
    %31 = tpu.matmul %29, %30, %cst {dimension_numbers = #tpu.dot_dimension_numbers<[1], [0], [0], [1], [0, 0, 1, 1], [], []>} : vector<64x72xbf16>, vector<72x8xbf16>, vector<64x8xf32> -> vector<64x8xf32>
    %c0_35 = arith.constant 0 : index
    %c0_36 = arith.constant 0 : index
    %32 = vector.load %arg3[%c0_35, %c0_36] : memref<1x8xf32, #tpu.memory_space<vmem>>, vector<1x8xf32>
    %33 = vector.broadcast %32 : vector<1x8xf32> to vector<64x8xf32>
    %34 = arith.addf %31, %33 : vector<64x8xf32>
    %cst_37 = arith.constant 0.000000e+00 : f32
    %35 = vector.broadcast %cst_37 : f32 to vector<64x8xf32>
    %36 = arith.maximumf %34, %35 : vector<64x8xf32>
    %c0_38 = arith.constant 0 : index
    %c0_39 = arith.constant 0 : index
    %37 = vector.load %arg4[%c0_38, %c0_39] : memref<8x8xbf16, #tpu.memory_space<vmem>>, vector<8x8xbf16>
    %cst_40 = arith.constant dense<0.000000e+00> : vector<64x8xf32>
    %38 = tpu.matmul %27, %37, %cst_40 {dimension_numbers = #tpu.dot_dimension_numbers<[1], [0], [0], [1], [0, 0, 1, 1], [], []>} : vector<64x8xbf16>, vector<8x8xbf16>, vector<64x8xf32> -> vector<64x8xf32>
    %c0_41 = arith.constant 0 : index
    %c0_42 = arith.constant 0 : index
    %39 = vector.load %arg5[%c0_41, %c0_42] : memref<1x8xf32, #tpu.memory_space<vmem>>, vector<1x8xf32>
    %40 = vector.broadcast %39 : vector<1x8xf32> to vector<64x8xf32>
    %41 = arith.addf %38, %40 : vector<64x8xf32>
    %42 = arith.truncf %36 : vector<64x8xf32> to vector<64x8xbf16>
    %c0_43 = arith.constant 0 : index
    %c0_44 = arith.constant 0 : index
    %43 = vector.load %arg6[%c0_43, %c0_44] : memref<8x4xbf16, #tpu.memory_space<vmem>>, vector<8x4xbf16>
    %cst_45 = arith.constant dense<0.000000e+00> : vector<64x4xf32>
    %44 = tpu.matmul %42, %43, %cst_45 {dimension_numbers = #tpu.dot_dimension_numbers<[1], [0], [0], [1], [0, 0, 1, 1], [], []>} : vector<64x8xbf16>, vector<8x4xbf16>, vector<64x4xf32> -> vector<64x4xf32>
    %c0_46 = arith.constant 0 : index
    %c0_47 = arith.constant 0 : index
    %45 = vector.load %arg7[%c0_46, %c0_47] : memref<8x4xbf16, #tpu.memory_space<vmem>>, vector<8x4xbf16>
    %cst_48 = arith.constant dense<0.000000e+00> : vector<64x4xf32>
    %46 = tpu.matmul %27, %45, %cst_48 {dimension_numbers = #tpu.dot_dimension_numbers<[1], [0], [0], [1], [0, 0, 1, 1], [], []>} : vector<64x8xbf16>, vector<8x4xbf16>, vector<64x4xf32> -> vector<64x4xf32>
    %47 = arith.addf %44, %46 : vector<64x4xf32>
    %c0_49 = arith.constant 0 : index
    %c0_50 = arith.constant 0 : index
    %48 = vector.load %arg8[%c0_49, %c0_50] : memref<1x4xf32, #tpu.memory_space<vmem>>, vector<1x4xf32>
    %49 = vector.broadcast %48 : vector<1x4xf32> to vector<64x4xf32>
    %50 = arith.addf %47, %49 : vector<64x4xf32>
    %cst_51 = arith.constant 0.000000e+00 : f32
    %51 = vector.broadcast %cst_51 : f32 to vector<64x4xf32>
    %52 = arith.maximumf %50, %51 : vector<64x4xf32>
    %53 = arith.truncf %52 : vector<64x4xf32> to vector<64x4xbf16>
    %c0_52 = arith.constant 0 : index
    %c0_53 = arith.constant 0 : index
    %54 = vector.load %arg9[%c0_52, %c0_53] : memref<4x8xbf16, #tpu.memory_space<vmem>>, vector<4x8xbf16>
    %cst_54 = arith.constant dense<0.000000e+00> : vector<64x8xf32>
    %55 = tpu.matmul %53, %54, %cst_54 {dimension_numbers = #tpu.dot_dimension_numbers<[1], [0], [0], [1], [0, 0, 1, 1], [], []>} : vector<64x4xbf16>, vector<4x8xbf16>, vector<64x8xf32> -> vector<64x8xf32>
    %c0_55 = arith.constant 0 : index
    %c0_56 = arith.constant 0 : index
    %56 = vector.load %arg10[%c0_55, %c0_56] : memref<1x8xf32, #tpu.memory_space<vmem>>, vector<1x8xf32>
    %57 = vector.broadcast %56 : vector<1x8xf32> to vector<64x8xf32>
    %58 = arith.addf %55, %57 : vector<64x8xf32>
    %59 = vector.shape_cast %58 : vector<64x8xf32> to vector<1x64x8xf32>
    %cst_57 = arith.constant dense<0xFF800000> : vector<1x8xf32>
    %60 = vector.multi_reduction <maximumf>, %59, %cst_57 [1] : vector<1x64x8xf32> to vector<1x8xf32>
    %61 = vector.shape_cast %60 : vector<1x8xf32> to vector<1x1x8xf32>
    %62 = vector.broadcast %61 : vector<1x1x8xf32> to vector<1x64x8xf32>
    %63 = arith.subf %59, %62 : vector<1x64x8xf32>
    %64 = math.exp %63 : vector<1x64x8xf32>
    %cst_58 = arith.constant dense<0.000000e+00> : vector<1x8xf32>
    %65 = vector.multi_reduction <add>, %64, %cst_58 [1] : vector<1x64x8xf32> to vector<1x8xf32>
    %66 = vector.shape_cast %65 : vector<1x8xf32> to vector<1x1x8xf32>
    %67 = tpu.reciprocal %66 {approx = true} : vector<1x1x8xf32> -> vector<1x1x8xf32>
    %68 = vector.shape_cast %36 : vector<64x8xf32> to vector<1x64x8xf32>
    %69 = vector.broadcast %67 : vector<1x1x8xf32> to vector<1x64x8xf32>
    %70 = arith.mulf %64, %69 : vector<1x64x8xf32>
    %71 = vector.shape_cast %41 : vector<64x8xf32> to vector<1x64x8xf32>
    %72 = arith.mulf %70, %71 : vector<1x64x8xf32>
    %73 = arith.addf %68, %72 : vector<1x64x8xf32>
    %c0_59 = arith.constant 0 : index
    %c0_60 = arith.constant 0 : index
    %c0_61 = arith.constant 0 : index
    %74 = vector.load %arg11[%c0_59, %c0_60, %c0_61] : memref<1x64x8xf32, #tpu.memory_space<vmem>>, vector<1x64x8xf32>
    tpu.vector_store %arg11[%c0_59, %c0_60, %c0_61], %73 {strides = array<i32>} : memref<1x64x8xf32, #tpu.memory_space<vmem>>, vector<1x64x8xf32>,
    return
  }
  func.func @transform_0(%arg0: i32) -> (i32, i32, i32, i32) {
    %c0_i32 = arith.constant 0 : i32
    %c0_i32_0 = arith.constant 0 : i32
    %c0_i32_1 = arith.constant 0 : i32
    %c0_i32_2 = arith.constant 0 : i32
    return %arg0, %c0_i32, %c0_i32_0, %c0_i32_1 : i32, i32, i32, i32
  }
  func.func @transform_1(%arg0: i32) -> (i32, i32) {
    %c0_i32 = arith.constant 0 : i32
    %c0_i32_0 = arith.constant 0 : i32
    %c0_i32_1 = arith.constant 0 : i32
    return %c0_i32, %c0_i32_0 : i32, i32
  }
  func.func @transform_2(%arg0: i32) -> (i32, i32) {
    %c0_i32 = arith.constant 0 : i32
    %c0_i32_0 = arith.constant 0 : i32
    %c0_i32_1 = arith.constant 0 : i32
    return %c0_i32, %c0_i32_0 : i32, i32
  }
  func.func @transform_3(%arg0: i32) -> (i32, i32) {
    %c0_i32 = arith.constant 0 : i32
    %c0_i32_0 = arith.constant 0 : i32
    %c0_i32_1 = arith.constant 0 : i32
    return %c0_i32, %c0_i32_0 : i32, i32
  }
  func.func @transform_4(%arg0: i32) -> (i32, i32) {
    %c0_i32 = arith.constant 0 : i32
    %c0_i32_0 = arith.constant 0 : i32
    %c0_i32_1 = arith.constant 0 : i32
    return %c0_i32, %c0_i32_0 : i32, i32
  }
  func.func @transform_5(%arg0: i32) -> (i32, i32) {
    %c0_i32 = arith.constant 0 : i32
    %c0_i32_0 = arith.constant 0 : i32
    %c0_i32_1 = arith.constant 0 : i32
    return %c0_i32, %c0_i32_0 : i32, i32
  }
  func.func @transform_6(%arg0: i32) -> (i32, i32) {
    %c0_i32 = arith.constant 0 : i32
    %c0_i32_0 = arith.constant 0 : i32
    %c0_i32_1 = arith.constant 0 : i32
    return %c0_i32, %c0_i32_0 : i32, i32
  }
  func.func @transform_7(%arg0: i32) -> (i32, i32) {
    %c0_i32 = arith.constant 0 : i32
    %c0_i32_0 = arith.constant 0 : i32
    %c0_i32_1 = arith.constant 0 : i32
    return %c0_i32, %c0_i32_0 : i32, i32
  }
  func.func @transform_8(%arg0: i32) -> (i32, i32) {
    %c0_i32 = arith.constant 0 : i32
    %c0_i32_0 = arith.constant 0 : i32
    %c0_i32_1 = arith.constant 0 : i32
    return %c0_i32, %c0_i32_0 : i32, i32
  }
  func.func @transform_9(%arg0: i32) -> (i32, i32) {
    %c0_i32 = arith.constant 0 : i32
    %c0_i32_0 = arith.constant 0 : i32
    %c0_i32_1 = arith.constant 0 : i32
    return %c0_i32, %c0_i32_0 : i32, i32
  }
  func.func @transform_10(%arg0: i32) -> (i32, i32, i32) {
    %c0_i32 = arith.constant 0 : i32
    %c0_i32_0 = arith.constant 0 : i32
    %c0_i32_1 = arith.constant 0 : i32
    return %arg0, %c0_i32, %c0_i32_0 : i32, i32, i32
  }
}

</mosaic_0001>

<bundles_post_ra>
// kernel: tpu_custom_call.1
= control target key start
LH: loop header
LB: loop body
LE: loop exit
PB: predicated region body
PF: predicated region fallthrough
CT: control target
= control target key end

     0   :  { %s2110_s13 = smov 0   ;;  %s2644_s0 = inlined_call_operand.vmem [shape: bf16[2,10,10,8], index: 0, kind: input, shape index: {}]   ;;  %s2645_s1 = inlined_call_operand.vmem [shape: bf16[72,8], index: 1, kind: input, shape index: {}]   ;;  %s2646_s2 = inlined_call_operand.vmem [shape: f32[1,8], index: 2, kind: input, shape index: {}]   ;;  %s2647_s3 = inlined_call_operand.vmem [shape: bf16[8,8], index: 3, kind: input, shape index: {}]   ;;  %s2648_s4 = inlined_call_operand.vmem [shape: f32[1,8], index: 4, kind: input, shape index: {}]   ;;  %s2649_s5 = inlined_call_operand.vmem [shape: bf16[8,4], index: 5, kind: input, shape index: {}]   ;;  %s2650_s6 = inlined_call_operand.vmem [shape: bf16[8,4], index: 6, kind: input, shape index: {}]   ;;  %s2651_s7 = inlined_call_operand.vmem [shape: f32[1,4], index: 7, kind: input, shape index: {}]   ;;  %s2652_s8 = inlined_call_operand.vmem [shape: bf16[4,8], index: 8, kind: input, shape index: {}]   ;;  %s2653_s9 = inlined_call_operand.vmem [shape: f32[1,8], index: 9, kind: input, shape index: {}]   ;;  %s2654_s10 = inlined_call_operand.vmem [shape: f32[2,64,8], index: 10, kind: output, shape index: {}]  }
   0x1 LB: > { %s1651_s14 = sadd.s32 4294967295, %s2045_s13   ;;  %p1655_p0 = scmp.ge.s32.totalorder %s2045_s13, 1  ;;  %s2045_s13 = sphi %s2110_s13, %s20_s13  }
   0x2   : > { %p312_p1 = scmp.lt.s32.totalorder %s2045_s13, 3 }
   0x4   : > { %p313_p2 = pnand %p1655_p0, %p312_p1 }
   0x5   : > { %p350_p3 = scmp.lt.s32.totalorder (!%p313_p2), %s1651_s14, 1  ;;  %vm458_vm0 = vcmask (!%p313_p2), 1045504   ;;  %vm409_vm1 = vcmask (!%p313_p2), 1046528   ;;  %s2047_s19 = smov (!%p313_p2), 24   ;;  %vm1061_vm2 = vcmask (!%p313_p2), 1043456   ;;  %vm929_vm3 = vcmask (!%p313_p2), 64512  }
   0x6   : > { %316 = sbr.rel (%p313_p2) target bundleno = 952 (0x3b8), region = 60  ;;  %s2048_s20 = smov (!%p313_p2), 16   ;;  %vm938_vm4 = vcmask (!%p313_p2), 130048   ;;  %vm947_vm5 = vcmask (!%p313_p2), 195584   ;;  %vm956_vm6 = vcmask (!%p313_p2), 261120   ;;  %vm965_vm7 = vcmask (!%p313_p2), 326656  }
   0x7   : > { %s2049_s21 = smov (!%p313_p2), 8   ;;  %s2050_s26 = smov (!%p313_p2), 32   ;;  %vm974_vm8 = vcmask (!%p313_p2), 392192   ;;  %vm983_vm9 = vcmask (!%p313_p2), 457728   ;;  %vm992_vm10 = vcmask (!%p313_p2), 523264   ;;  %vm1048_vm11 = vcmask (!%p313_p2), 588800  }
   0x8   : > { %s2051_s29 = smov (!%p313_p2), 40   ;;  %s2052_s12 = smov (!%p313_p2), 48   ;;  %vm1428_vm12 = vcmask (!%p313_p2), 1041408   ;;  %vm1415_vm13 = vcmask (!%p313_p2), 31744  }
   0x9   : > { %s2054_s16 = smov (!%p313_p2), 64  }
   0xd   : > { %s2656_s14 = smov (!%p350_p3, %s1651_s14), 1 }
   0xe   : > { %s1839_s15 = smul.u32 80, %s2656_s14  ;;  %s1738_s17 = sshll.u32 %s2656_s14, 6 }
  0x10   : > { %s2124_s18 = scalar_lea.vmem %s2644_s0, %s1839_s15  ;;  %s2053_s15 = smov 56  }
  0x11   : > { %v1661_v0 = vld [vmem:[%s2124_s18 + $0x18] ss:$8 sps:$4 sm:$0xff]   ;;  %v1659_v1 = vld [vmem:[%s2124_s18 + $0x8] ss:$8 sps:$4 sm:$0xff]   ;;  %v377_v2 = vld [vmem:[%s2124_s18 + $0x4] sm:$0x1] }
  0x12   : > { %v494_v3 = vunpack.c.l.bf16 %v1661_v0  ;;  %v495_v4 = vunpack.c.h.bf16 %v1661_v0  ;;  %v492_v5 = vunpack.c.l.bf16 %v1659_v1  ;;  %v493_v6 = vunpack.c.h.bf16 %v1659_v1  ;;  %v378_v7 = vld [vmem:[%s2124_s18 + $0xc] sm:$0x1]  ;;  %v434_v8 = vld [vmem:[%s2124_s18] sm:$0xe]  ;;  %v435_v9 = vld [vmem:[%s2124_s18 + $0x8] sm:$0xe] }
  0x13   : > { %v385_v10 = vunpack.c.l.bf16 %v377_v2  ;;  %v386_v11 = vunpack.c.l.bf16 %v378_v7  ;;  %v442_v12 = vunpack.c.l.bf16 %v434_v8  ;;  %v443_v13 = vunpack.c.l.bf16 %v435_v9  ;;  %v2133_v14 = vld [vmem:[%s2124_s18] ss:$8 sps:$4 sm:$0xff]   ;;  %v379_v19 = vld [vmem:[%s2124_s18 + $0x14] sm:$0x1]  ;;  %v380_v24 = vld [vmem:[%s2124_s18 + $0x1c] sm:$0x1] }
  0x14   : > { %v2135_v15 = vrot.slane %v495_v4, 1  ;;  %v1861_v16 = vpack.i.bf16 %v495_v4, %v494_v3  ;;  %v2137_v17 = vrot.slane %v494_v3, 1  ;;  %v2139_v18 = vrot.slane %v493_v6, 1  ;;  %v436_v29 = vld [vmem:[%s2124_s18 + $0x10] sm:$0xe]  ;;  %v2016_v2 = vld [vmem:[%s2645_s1] sm:$0xff]  }
  0x15   : > { %v1856_v20 = vpack.i.bf16 %v493_v6, %v492_v5  ;;  %v2142_v21 = vrot.slane %v492_v5, 1  ;;  %v459_v22 = vrot.slane %v442_v12, 2  ;;  %v460_v23 = vrot.slane %v385_v10, 2  ;;  %v437_v30 = vld [vmem:[%s2124_s18 + $0x18] sm:$0xe]  ;;  %1768 = vmatprep.subr.bf16.mxu0 %v2016_v2 }
  0x16   : > { %1862 = vrot.lane.b32.xlu1 %v1861_v16, %s2047_s19  ;;  %v462_v25 = vrot.slane %v443_v13, 2  ;;  %v463_v26 = vrot.slane %v386_v11, 2  ;;  %v369_v27 = vunpack.c.l.bf16 %v2133_v14  ;;  %v370_v28 = vunpack.c.h.bf16 %v2133_v14  ;;  %v2153_v35 = vld [vmem:[%s2124_s18 + $0x10] ss:$8 sps:$4 sm:$0xff]   ;;  %v1669_v44 = vld [vmem:[%s2124_s18 + $0x1c] sm:$0x1]  ;;  %1769 = vmatpush3.bf16.msra.mxu0 %v2016_v2 }
  0x17   : > { %1857 = vrot.lane.b32.xlu0 %v1856_v20, %s2047_s19  ;;  %v461_v31 = vsel %vm458_vm0, %v459_v22, %v460_v23  ;;  %v411_v32 = vrot.slane %v385_v10, 1  ;;  %v414_v33 = vrot.slane %v386_v11, 1  ;;  %v387_v34 = vunpack.c.l.bf16 %v379_v19  ;;  %v1670_v49 = vld [vmem:[%s2124_s18 + $0x24] sm:$0x1]  ;;  %v1667_v54 = vld [vmem:[%s2124_s18 + $0xc] sm:$0x1] }
  0x18   : > { %v464_v36 = vsel %vm458_vm0, %v462_v25, %v463_v26  ;;  %v410_v37 = vrot.slane %v369_v27, 1  ;;  %v413_v38 = vrot.slane %v370_v28, 1  ;;  %v388_v39 = vunpack.c.l.bf16 %v380_v24  ;;  %v1668_v55 = vld [vmem:[%s2124_s18 + $0x14] sm:$0x1]  ;;  %v1677_v60 = vld [vmem:[%s2124_s18 + $0x18] sm:$0xe] }
  0x19   : > { %v1876_v40 = vpack.i.bf16 %v464_v36, %v461_v31  ;;  %v444_v41 = vunpack.c.l.bf16 %v436_v29  ;;  %v445_v42 = vunpack.c.l.bf16 %v437_v30  ;;  %v466_v43 = vrot.slane %v387_v34, 2  ;;  %v1678_v1 = vld [vmem:[%s2124_s18 + $0x20] sm:$0xe]  ;;  %v1675_v19 = vld [vmem:[%s2124_s18 + $0x8] sm:$0xe] }
  0x1a   : > { %v412_v45 = vsel %vm409_vm1, %v410_v37, %v411_v32  ;;  %v415_v46 = vsel %vm409_vm1, %v413_v38, %v414_v33  ;;  %v469_v47 = vrot.slane %v388_v39, 2  ;;  %v371_v48 = vunpack.c.l.bf16 %v2153_v35  ;;  %v1676_v25 = vld [vmem:[%s2124_s18 + $0x10] sm:$0xe]  ;;  %v2017_v26 = vld [vmem:[%s2645_s1 + $0x8] sm:$0xff]  }
  0x1b   : > { %1877 = vrot.lane.b32.xlu1 %v1876_v40, %s2048_s20  ;;  %v1866_v50 = vpack.i.bf16 %v415_v46, %v412_v45  ;;  %v465_v51 = vrot.slane %v444_v41, 2  ;;  %v468_v52 = vrot.slane %v445_v42, 2  ;;  %v372_v53 = vunpack.c.h.bf16 %v2153_v35  ;;  %v1683_v36 = vld [vmem:[%s2124_s18 + $0x10] ss:$8 sps:$4 sm:$0xff]   ;;  %1770 = vmatprep.subr.bf16.mxu0 %v2017_v26 }
  0x1c   : > { %v416_v56 = vrot.slane %v371_v48, 1  ;;  %v417_v57 = vrot.slane %v387_v34, 1  ;;  %v420_v58 = vrot.slane %v388_v39, 1  ;;  %v510_v59 = vunpack.c.l.bf16 %v1669_v44  ;;  %1771 = vmatpush3.bf16.msra.mxu0 %v2017_v26  ;;  %v2219_v44 = vld [vmem:[%s2124_s18 + $0x2c] sm:$0x1]  ;;  %v2018_v45 = vld [vmem:[%s2645_s1 + $0x10] sm:$0xff]  }
  0x1d   : > { %1867 = vrot.lane.b32.xlu0 %v1866_v50, %s2049_s21  ;;  %v467_v61 = vsel %vm458_vm0, %v465_v51, %v466_v43  ;;  %v470_v62 = vsel %vm458_vm0, %v468_v52, %v469_v47  ;;  %v419_v63 = vrot.slane %v372_v53, 1  ;;  %v511_v0 = vunpack.c.l.bf16 %v1670_v49  ;;  %v2216_v43 = vld [vmem:[%s2124_s18 + $0x24] sm:$0x1]  ;;  %v1691_v51 = vld [vmem:[%s2124_s18 + $0x14] sm:$0x1]  ;;  %1772 = vmatprep.subr.bf16.mxu0 %v2018_v45 }
  0x1e   : > { %v1881_v3 = vpack.i.bf16 %v470_v62, %v467_v61  ;;  %v418_v4 = vsel %vm409_vm1, %v416_v56, %v417_v57  ;;  %v539_v5 = vrot.slane %v510_v59, 1  ;;  %v508_v6 = vunpack.c.l.bf16 %v1667_v54  ;;  %v1692_v52 = vld [vmem:[%s2124_s18 + $0x1c] sm:$0x1]  ;;  %v1700_v26 = vld [vmem:[%s2124_s18 + $0x18] sm:$0xe] }
  0x1f   : > { %v421_v7 = vsel %vm409_vm1, %v419_v63, %v420_v58  ;;  %v542_v8 = vrot.slane %v511_v0, 1  ;;  %v509_v9 = vunpack.c.l.bf16 %v1668_v55  ;;  %v574_v10 = vunpack.c.l.bf16 %v1677_v60  ;;  %v2229_v58 = vld [vmem:[%s2124_s18 + $0x20] ss:$8 sps:$4 sm:$0xff]  }
  0x20   : > { %1882 = vrot.lane.b32.xlu1 %v1881_v3, %s2048_s20  ;;  %v1871_v11 = vpack.i.bf16 %v421_v7, %v418_v4  ;;  %v2186_v12 = vsel %vm409_vm1, %v2137_v17, %v539_v5  ;;  %v533_v13 = vrot.slane %v508_v6, 1  ;;  %v575_v16 = vunpack.c.l.bf16 %v1678_v1  ;;  %1773 = vmatpush3.bf16.msra.mxu0 %v2018_v45  ;;  %v1701_v45 = vld [vmem:[%s2124_s18 + $0x20] sm:$0xe] }
  0x21   : > { %v2191_v20 = vsel %vm409_vm1, %v2135_v15, %v542_v8  ;;  %v536_v22 = vrot.slane %v509_v9, 1  ;;  %v594_v23 = vrot.slane %v574_v10, 2  ;;  %v595_v24 = vrot.slane %v510_v59, 2  ;;  %v1685_v15 = vld [vmem:[%s2124_s18 + $0x20] ss:$8 sps:$4 sm:$0xff]  }
  0x22   : > { %1872 = vrot.lane.b32.xlu0 %v1871_v11, %s2049_s21  ;;  %v1891_v17 = vpack.i.bf16 %v2191_v20, %v2186_v12  ;;  %v2202_v29 = vsel %vm409_vm1, %v2142_v21, %v533_v13  ;;  %v597_v30 = vrot.slane %v575_v16, 2  ;;  %v598_v33 = vrot.slane %v511_v0, 2  ;;  %v2232_v59 = vld [vmem:[%s2124_s18 + $0x24] sm:$0x1]  ;;  %v2237_v0 = vld [vmem:[%s2124_s18 + $0x2c] sm:$0x1] }
  0x23   : > { %v2207_v31 = vsel %vm409_vm1, %v2139_v18, %v536_v22  ;;  %v596_v32 = vsel %vm458_vm0, %v594_v23, %v595_v24  ;;  %v572_v34 = vunpack.c.l.bf16 %v1675_v19  ;;  %v573_v37 = vunpack.c.l.bf16 %v1676_v25  ;;  %v1699_v16 = vld [vmem:[%s2124_s18 + $0x10] sm:$0xe]  ;;  %v2019_v19 = vld [vmem:[%s2645_s1 + $0x18] sm:$0xff]  }
  0x24   : > { %1892 = vrot.lane.b32.xlu1 %v1891_v17, %s2050_s26  ;;  %v1886_v21 = vpack.i.bf16 %v2207_v31, %v2202_v29  ;;  %v589_v38 = vrot.slane %v508_v6, 2  ;;  %v592_v18 = vrot.slane %v509_v9, 2  ;;  %v599_v39 = vsel %vm458_vm0, %v597_v30, %v598_v33  ;;  %v2268_v33 = vld [vmem:[%s2124_s18 + $0x30] ss:$8 sps:$4 sm:$0xff]   ;;  %1774 = vmatprep.subr.bf16.mxu0 %v2019_v19 }
  0x25   : > { %v588_v40 = vrot.slane %v572_v34, 2  ;;  %v623_v41 = vunpack.c.l.bf16 %v1685_v15  ;;  %v624_v42 = vunpack.c.h.bf16 %v1685_v15  ;;  %v1901_v46 = vpack.i.bf16 %v599_v39, %v596_v32  ;;  %1775 = vmatpush3.bf16.msra.mxu0 %v2019_v19 }
  0x26   : > { %1887 = vrot.lane.b32.xlu0 %v1886_v21, %s2050_s26  ;;  %v591_v47 = vrot.slane %v573_v37, 2  ;;  %v621_v49 = vunpack.c.l.bf16 %v1683_v36  ;;  %v622_v50 = vunpack.c.h.bf16 %v1683_v36  ;;  %v639_v2 = vunpack.c.l.bf16 %v2216_v43 }
  0x27   : > { %v590_v54 = vsel %vm458_vm0, %v588_v40, %v589_v38  ;;  %v670_v55 = vrot.slane %v624_v42, 1  ;;  %v1911_v56 = vpack.i.bf16 %v624_v42, %v623_v41  ;;  %v667_v57 = vrot.slane %v623_v41, 1  ;;  %v383_v38 = vld [vmem:[%s2124_s18 + $0x34] sm:$0x1] }
  0x28   : > { %1902 = vrot.lane.b32.xlu1 %v1901_v46, %s2051_s29  ;;  %v593_v60 = vsel %vm458_vm0, %v591_v47, %v592_v18  ;;  %v664_v61 = vrot.slane %v622_v50, 1  ;;  %v1906_v62 = vpack.i.bf16 %v622_v50, %v621_v49  ;;  %v661_v63 = vrot.slane %v621_v49, 1  ;;  %v384_v18 = vld [vmem:[%s2124_s18 + $0x3c] sm:$0x1]  ;;  %v1702_v46 = vld [vmem:[%s2124_s18 + $0x28] sm:$0xe] }
  0x29   : > { %v1896_v1 = vpack.i.bf16 %v593_v60, %v590_v54  ;;  %v640_v3 = vunpack.c.l.bf16 %v2219_v44  ;;  %v637_v4 = vunpack.c.l.bf16 %v1691_v51  ;;  %v638_v5 = vunpack.c.l.bf16 %v1692_v52  ;;  %v1663_v44 = vld [vmem:[%s2124_s18 + $0x28] ss:$8 sps:$4 sm:$0xff]  }
  0x2a   : > { %v373_v6 = vunpack.c.l.bf16 %v2229_v58  ;;  %v374_v7 = vunpack.c.h.bf16 %v2229_v58  ;;  %v389_v8 = vunpack.c.l.bf16 %v2232_v59  ;;  %v668_v9 = vrot.slane %v639_v2, 1  ;;  %v1671_v59 = vld [vmem:[%s2124_s18 + $0x2c] sm:$0x1] }
  0x2b   : > { %1897 = vrot.lane.b32.xlu0 %v1896_v1, %s2051_s29  ;;  %v671_v10 = vrot.slane %v640_v3, 1  ;;  %v662_v11 = vrot.slane %v637_v4, 1  ;;  %v390_v13 = vunpack.c.l.bf16 %v2237_v0  ;;  %v665_v22 = vrot.slane %v638_v5, 1 }
  0x2c   : > { %1912 = vrot.lane.b32.xlu1 %v1911_v56, %s2052_s12  ;;  %v422_v23 = vrot.slane %v373_v6, 1  ;;  %v423_v24 = vrot.slane %v389_v8, 1  ;;  %v425_v25 = vrot.slane %v374_v7, 1  ;;  %v669_v17 = vsel %vm409_vm1, %v667_v57, %v668_v9 }
  0x2d   : > { %v672_v30 = vsel %vm409_vm1, %v670_v55, %v671_v10  ;;  %v663_v15 = vsel %vm409_vm1, %v661_v63, %v662_v11  ;;  %v426_v32 = vrot.slane %v390_v13, 1  ;;  %v666_v36 = vsel %vm409_vm1, %v664_v61, %v665_v22  ;;  %v440_v63 = vld [vmem:[%s2124_s18 + $0x30] sm:$0xe]  ;;  %v441_v10 = vld [vmem:[%s2124_s18 + $0x38] sm:$0xe] }
  0x2e   : > { %v1921_v34 = vpack.i.bf16 %v672_v30, %v669_v17  ;;  %v424_v21 = vsel %vm409_vm1, %v422_v23, %v423_v24  ;;  %v693_v37 = vunpack.c.l.bf16 %v1699_v16  ;;  %v1916_v39 = vpack.i.bf16 %v666_v36, %v663_v15  ;;  %v438_v23 = vld [vmem:[%s2124_s18 + $0x20] sm:$0xe]  ;;  %v439_v30 = vld [vmem:[%s2124_s18 + $0x28] sm:$0xe] }
  0x2f   : > { %1907 = vrot.lane.b32.xlu0 %v1906_v62, %s2052_s12  ;;  %v427_v40 = vsel %vm409_vm1, %v425_v25, %v426_v32  ;;  %v694_v41 = vunpack.c.l.bf16 %v1700_v26  ;;  %v710_v42 = vrot.slane %v637_v4, 2  ;;  %v713_v50 = vrot.slane %v638_v5, 2 }
  0x30   : > { %1922 = vrot.lane.b32.xlu1 %v1921_v34, %s2053_s15  ;;  %v1931_v47 = vpack.i.bf16 %v427_v40, %v424_v21  ;;  %v709_v49 = vrot.slane %v693_v37, 2  ;;  %v375_v51 = vunpack.c.l.bf16 %v2268_v33  ;;  %v376_v54 = vunpack.c.h.bf16 %v2268_v33  ;;  %v1665_v21 = vld [vmem:[%s2124_s18 + $0x38] ss:$8 sps:$4 sm:$0xff]  }
  0x31   : > { %v712_v52 = vrot.slane %v694_v41, 2  ;;  %v391_v55 = vunpack.c.l.bf16 %v383_v38  ;;  %v392_v56 = vunpack.c.l.bf16 %v384_v18  ;;  %v695_v61 = vunpack.c.l.bf16 %v1701_v45 }
  0x32   : > { %v711_v57 = vsel %vm458_vm0, %v709_v49, %v710_v42  ;;  %v428_v60 = vrot.slane %v375_v51, 1  ;;  %v696_v62 = vunpack.c.l.bf16 %v1702_v46  ;;  %v431_v5 = vrot.slane %v376_v54, 1 }
  0x33   : > { %1917 = vrot.lane.b32.xlu0 %v1916_v39, %s2053_s15  ;;  %v714_v1 = vsel %vm458_vm0, %v712_v52, %v713_v50  ;;  %v429_v4 = vrot.slane %v391_v55, 1  ;;  %v432_v9 = vrot.slane %v392_v56, 1  ;;  %v715_v16 = vrot.slane %v695_v61, 2  ;;  %v1672_v61 = vld [vmem:[%s2124_s18 + $0x34] sm:$0x1] }
  0x34   : > { %1932 = vrot.lane.b32.xlu1 %v1931_v47, %s2049_s21  ;;  %v1926_v11 = vpack.i.bf16 %v714_v1, %v711_v57  ;;  %v716_v19 = vrot.slane %v639_v2, 2  ;;  %v718_v22 = vrot.slane %v696_v62, 2  ;;  %v719_v26 = vrot.slane %v640_v3, 2  ;;  %v1673_v47 = vld [vmem:[%s2124_s18 + $0x3c] sm:$0x1] }
  0x35   : > { %v430_v24 = vsel %vm409_vm1, %v428_v60, %v429_v4  ;;  %v433_v25 = vsel %vm409_vm1, %v431_v5, %v432_v9  ;;  %v448_v17 = vunpack.c.l.bf16 %v440_v63  ;;  %v449_v34 = vunpack.c.l.bf16 %v441_v10  ;;  %v1682_v5 = vld [vmem:[%s2124_s18 + $0x40] sm:$0xe]  ;;  %v1679_v9 = vld [vmem:[%s2124_s18 + $0x28] sm:$0xe] }
  0x36   : > { %v1941_v15 = vpack.i.bf16 %v433_v25, %v430_v24  ;;  %v717_v32 = vsel %vm458_vm0, %v715_v16, %v716_v19  ;;  %v478_v36 = vrot.slane %v391_v55, 2  ;;  %v720_v43 = vsel %vm458_vm0, %v718_v22, %v719_v26  ;;  %v1680_v26 = vld [vmem:[%s2124_s18 + $0x30] sm:$0xe] }
  0x37   : > { %1927 = vrot.lane.b32.xlu0 %v1926_v11, %s2054_s16  ;;  %v477_v2 = vrot.slane %v448_v17, 2  ;;  %v481_v37 = vrot.slane %v392_v56, 2  ;;  %v446_v38 = vunpack.c.l.bf16 %v438_v23  ;;  %v1936_v3 = vpack.i.bf16 %v720_v43, %v717_v32  ;;  %v1674_v56 = vld [vmem:[%s2124_s18 + $0x44] sm:$0x1] }
  0x38   : > { %1942 = vrot.lane.b32.xlu1 %v1941_v15, %s2049_s21  ;;  %v480_v18 = vrot.slane %v449_v34, 2  ;;  %v447_v39 = vunpack.c.l.bf16 %v439_v30  ;;  %v472_v40 = vrot.slane %v389_v8, 2  ;;  %v475_v45 = vrot.slane %v390_v13, 2  ;;  %v1681_v13 = vld [vmem:[%s2124_s18 + $0x38] sm:$0xe] }
  0x39   : > { %v479_v41 = vsel %vm458_vm0, %v477_v2, %v478_v36  ;;  %v471_v42 = vrot.slane %v446_v38, 2  ;;  %v498_v46 = vunpack.c.l.bf16 %v1665_v21  ;;  %v499_v52 = vunpack.c.h.bf16 %v1665_v21 }
  0x3a   : > { %v482_v49 = vsel %vm458_vm0, %v480_v18, %v481_v37  ;;  %v474_v50 = vrot.slane %v447_v39, 2  ;;  %v496_v55 = vunpack.c.l.bf16 %v1663_v44  ;;  %v497_v0 = vunpack.c.h.bf16 %v1663_v44 }
  0x3b   : > { %1937 = vrot.lane.b32.xlu0 %v1936_v3, %s2054_s16  ;;  %v1951_v8 = vpack.i.bf16 %v482_v49, %v479_v41  ;;  %v473_v57 = vsel %vm458_vm0, %v471_v42, %v472_v40  ;;  %v550_v60 = vrot.slane %v498_v46, 1  ;;  %v553_v63 = vrot.slane %v499_v52, 1  ;;  %v1689_v41 = vld [vmem:[%s2124_s18 + $0x40] ss:$8 sps:$4 sm:$0xff]  }
  0x3c   : > { %v476_v62 = vsel %vm458_vm0, %v474_v50, %v475_v45  ;;  %v1961_v1 = vpack.i.bf16 %v499_v52, %v498_v46  ;;  %v544_v4 = vrot.slane %v496_v55, 1  ;;  %v547_v11 = vrot.slane %v497_v0, 1  ;;  %v1687_v46 = vld [vmem:[%s2124_s18 + $0x30] ss:$8 sps:$4 sm:$0xff]  }
  0x3d   : > { %1952 = vrot.lane.b32.xlu1 %v1951_v8, %s2048_s20  ;;  %v1946_v10 = vpack.i.bf16 %v476_v62, %v473_v57  ;;  %v1956_v16 = vpack.i.bf16 %v497_v0, %v496_v55  ;;  %v514_v19 = vunpack.c.l.bf16 %v1673_v47  ;;  %v515_v22 = vunpack.c.l.bf16 %v1674_v56  ;;  %v1697_v47 = vld [vmem:[%s2124_s18 + $0x44] sm:$0x1] }
  0x3e   : > { %v512_v23 = vunpack.c.l.bf16 %v1671_v59  ;;  %v513_v24 = vunpack.c.l.bf16 %v1672_v61  ;;  %v578_v25 = vunpack.c.l.bf16 %v1681_v13  ;;  %v579_v30 = vunpack.c.l.bf16 %v1682_v5 }
  0x3f   : > { %1947 = vrot.lane.b32.xlu0 %v1946_v10, %s2048_s20  ;;  %v551_v17 = vrot.slane %v514_v19, 1  ;;  %v607_v15 = vrot.slane %v514_v19, 2  ;;  %v576_v32 = vunpack.c.l.bf16 %v1679_v9  ;;  %v554_v34 = vrot.slane %v515_v22, 1  ;;  %v1703_v19 = vld [vmem:[%s2124_s18 + $0x30] sm:$0xe]  ;;  %s359_s20 = scalar_lea.vmem %s2654_s10, %s1738_s17 }
  0x40   : > { %v545_v36 = vrot.slane %v512_v23, 1  ;;  %v548_v21 = vrot.slane %v513_v24, 1  ;;  %v606_v43 = vrot.slane %v578_v25, 2  ;;  %v609_v37 = vrot.slane %v579_v30, 2 }
  0x41   : > { %1962 = vrot.lane.b32.xlu1 %v1961_v1, %s2047_s19  ;;  %v2326_v2 = vsel %vm409_vm1, %v550_v60, %v551_v17  ;;  %v610_v38 = vrot.slane %v515_v22, 2  ;;  %v577_v44 = vunpack.c.l.bf16 %v1680_v26  ;;  %v2329_v3 = vsel %vm409_vm1, %v553_v63, %v554_v34  ;;  %v1698_v60 = vld [vmem:[%s2124_s18 + $0x4c] sm:$0x1]  ;;  %v1695_v63 = vld [vmem:[%s2124_s18 + $0x34] sm:$0x1] }
  0x42   : > { %v2332_v18 = vsel %vm409_vm1, %v544_v4, %v545_v36  ;;  %v2335_v39 = vsel %vm409_vm1, %v547_v11, %v548_v21  ;;  %v608_v40 = vsel %vm458_vm0, %v606_v43, %v607_v15  ;;  %v1971_v42 = vpack.i.bf16 %v2329_v3, %v2326_v2  ;;  %v1696_v1 = vld [vmem:[%s2124_s18 + $0x3c] sm:$0x1]  ;;  %v1705_v4 = vld [vmem:[%s2124_s18 + $0x40] sm:$0xe] }
  0x43   : > { %1957 = vrot.lane.b32.xlu0 %v1956_v16, %s2047_s19  ;;  %v1966_v45 = vpack.i.bf16 %v2335_v39, %v2332_v18  ;;  %v611_v49 = vsel %vm458_vm0, %v609_v37, %v610_v38  ;;  %v600_v50 = vrot.slane %v576_v32, 2  ;;  %v601_v52 = vrot.slane %v512_v23, 2  ;;  %v1706_v16 = vld [vmem:[%s2124_s18 + $0x48] sm:$0xe]  ;;  %v1704_v32 = vld [vmem:[%s2124_s18 + $0x38] sm:$0xe] }
  0x44   : > { %v603_v55 = vrot.slane %v577_v44, 2  ;;  %v1981_v56 = vpack.i.bf16 %v611_v49, %v608_v40  ;;  %v604_v59 = vrot.slane %v513_v24, 2  ;;  %v627_v8 = vunpack.c.l.bf16 %v1689_v41 }
  0x45   : > { %1972 = vrot.lane.b32.xlu1 %v1971_v42, %s2050_s26  ;;  %v628_v57 = vunpack.c.h.bf16 %v1689_v41  ;;  %v602_v0 = vsel %vm458_vm0, %v600_v50, %v601_v52  ;;  %v625_v61 = vunpack.c.l.bf16 %v1687_v46  ;;  %v626_v13 = vunpack.c.h.bf16 %v1687_v46 }
  0x46   : > { %v643_v62 = vunpack.c.l.bf16 %v1697_v47  ;;  %v605_v5 = vsel %vm458_vm0, %v603_v55, %v604_v59  ;;  %v679_v11 = vrot.slane %v627_v8, 1  ;;  %v644_v26 = vunpack.c.l.bf16 %v1698_v60 }
  0x47   : > { %1967 = vrot.lane.b32.xlu0 %v1966_v45, %s2050_s26  ;;  %v682_v9 = vrot.slane %v628_v57, 1  ;;  %v1991_v10 = vpack.i.bf16 %v628_v57, %v627_v8  ;;  %v1976_v22 = vpack.i.bf16 %v605_v5, %v602_v0  ;;  %v676_v23 = vrot.slane %v626_v13, 1 }
  0x48   : > { %v1986_v24 = vpack.i.bf16 %v626_v13, %v625_v61  ;;  %v673_v25 = vrot.slane %v625_v61, 1  ;;  %v680_v17 = vrot.slane %v643_v62, 1  ;;  %v641_v30 = vunpack.c.l.bf16 %v1695_v63  ;;  %v2020_v61 = vld [vmem:[%s2645_s1 + $0x20] ss:$0 sps:$4 sm:$0xff]  }
  0x49   : > { %1982 = vrot.lane.b32.xlu1 %v1981_v56, %s2051_s29  ;;  %v642_v15 = vunpack.c.l.bf16 %v1696_v1  ;;  %v699_v34 = vunpack.c.l.bf16 %v1705_v4  ;;  %v700_v36 = vunpack.c.l.bf16 %v1706_v16  ;;  %v728_v21 = vrot.slane %v643_v62, 2  ;;  %v1138_v13 = vld [vmem:[%s2647_s3] sm:$0xf]  ;;  %1834 = vmatprep.subr.msk.bf16.mxu0 %vm1061_vm2, %v2020_v61 }
  0x4a   : > { %v697_v43 = vunpack.c.l.bf16 %v1703_v19  ;;  %v681_v37 = vsel %vm409_vm1, %v679_v11, %v680_v17  ;;  %v683_v38 = vrot.slane %v644_v26, 1  ;;  %v674_v44 = vrot.slane %v641_v30, 1  ;;  %v1231_v11 = vld [vmem:[%s2650_s6] sm:$0xf]  ;;  %1835 = vmatprep.subr.msk.bf16.mxu1 %vm1061_vm2, %v1138_v13 }
  0x4b   : > { %1977 = vrot.lane.b32.xlu0 %v1976_v22, %s2051_s29  ;;  %v677_v40 = vrot.slane %v642_v15, 1  ;;  %v727_v41 = vrot.slane %v699_v34, 2  ;;  %v730_v42 = vrot.slane %v700_v36, 2  ;;  %v731_v45 = vrot.slane %v644_v26, 2 }
  0x4c   : > { %v698_v46 = vunpack.c.l.bf16 %v1704_v32  ;;  %v684_v47 = vsel %vm409_vm1, %v682_v9, %v683_v38  ;;  %v675_v49 = vsel %vm409_vm1, %v673_v25, %v674_v44  ;;  %v721_v52 = vrot.slane %v697_v43, 2 }
  0x4d   : > { %1992 = vrot.lane.b32.xlu1 %v1991_v10, %s2052_s12  ;;  %v678_v50 = vsel %vm409_vm1, %v676_v23, %v677_v40  ;;  %v2001_v55 = vpack.i.bf16 %v684_v47, %v681_v37  ;;  %v729_v56 = vsel %vm458_vm0, %v727_v41, %v728_v21  ;;  %v732_v59 = vsel %vm458_vm0, %v730_v42, %v731_v45 }
  0x4e   : > { %v1996_v8 = vpack.i.bf16 %v678_v50, %v675_v49  ;;  %v722_v57 = vrot.slane %v641_v30, 2  ;;  %v724_v60 = vrot.slane %v698_v46, 2  ;;  %v725_v0 = vrot.slane %v642_v15, 2 }
  0x4f   : > { %1987 = vrot.lane.b32.xlu0 %v1986_v24, %s2052_s12  ;;  %v2011_v62 = vpack.i.bf16 %v732_v59, %v729_v56  ;;  %v733_v4 = vpack.c.bf16 %v2207_v31, %v2202_v29  ;;  %v1063_v9 = vsel %vm1061_vm2, %v2020_v61, 0  ;;  %v1159_v10 = vsel %vm1061_vm2, %v1138_v13, 0 }
  0x50   : > { %v723_v63 = vsel %vm458_vm0, %v721_v52, %v722_v57  ;;  %v726_v1 = vsel %vm458_vm0, %v724_v60, %v725_v0  ;;  %v734_v16 = vpack.c.bf16 %v2191_v20, %v2186_v12  ;;  %1777 = vmatpush3.bf16.msra.mxu0 %v1063_v9  ;;  %v735_v29 = vpack.c.bf16 %v2335_v39, %v2332_v18 }
  0x51   : > { %2002 = vrot.lane.b32.xlu1 %v2001_v55, %s2053_s15  ;;  %v2006_v5 = vpack.i.bf16 %v726_v1, %v723_v63  ;;  %1787 = vmatpush3.bf16.msra.mxu1 %v1159_v10  ;;  %v1233_v31 = vsel %vm1061_vm2, %v1231_v11, 0  ;;  %v736_v12 = vpack.c.bf16 %v2329_v3, %v2326_v2 }
  0x52   : > { %1788 = vmatprep.mubr.msk.bf16.mxu1 %vm929_vm3, %v733_v4  ;;  %1836 = vmatprep.subr.msk.bf16.mxu1 %vm1061_vm2, %v1231_v11 }
  0x53   : > { %1997 = vrot.lane.b32.xlu0 %v1996_v8, %s2053_s15 }
  0x54   : > { %1789 = vmatmul.mubr.msk.bf16.vlgmr.msra.gmra.mrb[0].mxu1 %vm929_vm3, %v734_v16 }
  0x55   : > { %2012 = vrot.lane.b32.xlu1 %v2011_v62, %s2054_s16  ;;  %1792 = vmatprep.mubr.msk.bf16.mxu1 %vm929_vm3, %v735_v29 }
  0x56   : > { %1797 = vmatpush3.bf16.msra.mxu1 %v1233_v31 }
  0x57   : > { %2007 = vrot.lane.b32.xlu0 %v2006_v5, %s2054_s16 }
  0x5c   : > { %1793 = vmatmul.mubr.msk.bf16.gmra.mrb[4].mxu1 %vm929_vm3, %v736_v12 }
  0x5d   : > { %1798 = vmatprep.mubr.msk.bf16.mxu1 %vm929_vm3, %v733_v4 }
  0x64   : > { %1799 = vmatmul.mubr.msk.bf16.vlgmr.msra.gmra.mrb[8].mxu1 %vm929_vm3, %v734_v16 }
  0x65   : > { %1802 = vmatprep.mubr.msk.bf16.mxu1 %vm929_vm3, %v735_v29 }
  0x6c   : > { %1803 = vmatmul.mubr.msk.bf16.gmra.mrb[12].mxu1 %vm929_vm3, %v736_v12 }
  0x88   : > { %v1863_v20 = vpop.permute.xlu1 %1862 }
  0x89   : > { %v1858_v18 = vpop.permute.xlu0 %1857  ;;  %v1865_v42 = vunpack.i.h.bf16 %v1863_v20  ;;  %v1864_v45 = vunpack.i.l.bf16 %v1863_v20 }
  0x8a   : > { %v1860_v46 = vunpack.i.h.bf16 %v1858_v18  ;;  %v1859_v47 = vunpack.i.l.bf16 %v1858_v18 }
  0x8d   : > { %v1878_v39 = vpop.permute.xlu1 %1877 }
  0x8e   : > { %v1880_v32 = vunpack.i.h.bf16 %v1878_v39  ;;  %v1879_v34 = vunpack.i.l.bf16 %v1878_v39 }
  0x8f   : > { %v1868_v19 = vpop.permute.xlu0 %1867 }
  0x90   : > { %v1870_v3 = vunpack.i.h.bf16 %v1868_v19  ;;  %v1869_v26 = vunpack.i.l.bf16 %v1868_v19 }
  0x92   : > { %v1883_v22 = vpop.permute.xlu1 %1882  ;;  %v931_v21 = vsel %vm929_vm3, %v370_v28, %v1870_v3  ;;  %v930_v43 = vsel %vm929_vm3, %v369_v27, %v1869_v26 }
  0x93   : > { %v1885_v37 = vunpack.i.h.bf16 %v1883_v22  ;;  %v1884_v38 = vunpack.i.l.bf16 %v1883_v22  ;;  %v940_v28 = vsel %vm938_vm4, %v931_v21, %v1880_v32  ;;  %v939_v14 = vsel %vm938_vm4, %v930_v43, %v1879_v34 }
  0x94   : > { %v1873_v23 = vpop.permute.xlu0 %1872  ;;  %v948_v50 = vsel %vm947_vm5, %v939_v14, %v1859_v47  ;;  %v949_v52 = vsel %vm947_vm5, %v940_v28, %v1860_v46 }
  0x95   : > { %v1875_v17 = vunpack.i.h.bf16 %v1873_v23  ;;  %v1874_v30 = vunpack.i.l.bf16 %v1873_v23 }
  0x96   : > { %v2405_v24 = vpop.permute.xlu1 %1892 }
  0x97   : > { %v933_v44 = vsel %vm929_vm3, %v372_v53, %v1875_v17  ;;  %v932_v40 = vsel %vm929_vm3, %v371_v48, %v1874_v30  ;;  %v1895_v8 = vunpack.i.h.bf16 %v2405_v24  ;;  %v1894_v57 = vunpack.i.l.bf16 %v2405_v24 }
  0x98   : > { %v1888_v25 = vpop.permute.xlu0 %1887  ;;  %v942_v53 = vsel %vm938_vm4, %v933_v44, %v1885_v37  ;;  %v941_v35 = vsel %vm938_vm4, %v932_v40, %v1884_v38 }
  0x99   : > { %v1890_v49 = vunpack.i.h.bf16 %v1888_v25  ;;  %v1889_v48 = vunpack.i.l.bf16 %v1888_v25  ;;  %v950_v13 = vsel %vm947_vm5, %v941_v35, %v1864_v45  ;;  %v951_v62 = vsel %vm947_vm5, %v942_v53, %v1865_v42 }
  0x9a   : > { %v2407_v2 = vpop.permute.xlu1 %1902  ;;  %v959_v3 = vsel %vm956_vm6, %v950_v13, %v1894_v57  ;;  %v960_v26 = vsel %vm956_vm6, %v951_v62, %v1895_v8 }
  0x9b   : > { %v957_v4 = vsel %vm956_vm6, %v948_v50, %v1889_v48  ;;  %v958_v5 = vsel %vm956_vm6, %v949_v52, %v1890_v49  ;;  %v1905_v9 = vunpack.i.h.bf16 %v2407_v2  ;;  %v1904_v10 = vunpack.i.l.bf16 %v2407_v2 }
  0x9d   : > { %v1898_v15 = vpop.permute.xlu0 %1897  ;;  %v969_v32 = vsel %vm965_vm7, %v960_v26, %v1905_v9 }
  0x9e   : > { %v2409_v36 = vpop.permute.xlu1 %1912  ;;  %v1900_v55 = vunpack.i.h.bf16 %v1898_v15  ;;  %v1899_v56 = vunpack.i.l.bf16 %v1898_v15  ;;  %v968_v15 = vsel %vm965_vm7, %v959_v3, %v1904_v10 }
  0x9f   : > { %v1915_v29 = vunpack.i.h.bf16 %v2409_v36  ;;  %v1914_v31 = vunpack.i.l.bf16 %v2409_v36 }
  0xa0   : > { %v966_v11 = vsel %vm965_vm7, %v957_v4, %v1899_v56  ;;  %v967_v16 = vsel %vm965_vm7, %v958_v5, %v1900_v55 }
  0xa1   : > { %v1908_v41 = vpop.permute.xlu0 %1907  ;;  %v977_v21 = vsel %vm974_vm8, %v968_v15, %v1914_v31  ;;  %v978_v43 = vsel %vm974_vm8, %v969_v32, %v1915_v29 }
  0xa2   : > { %v1923_v27 = vpop.permute.xlu1 %1922  ;;  %v1910_v60 = vunpack.i.h.bf16 %v1908_v41  ;;  %v1909_v0 = vunpack.i.l.bf16 %v1908_v41 }
  0xa3   : > { %v1925_v23 = vunpack.i.h.bf16 %v1923_v27  ;;  %v1924_v24 = vunpack.i.l.bf16 %v1923_v27 }
  0xa4   : > { %v975_v20 = vsel %vm974_vm8, %v966_v11, %v1909_v0  ;;  %v976_v18 = vsel %vm974_vm8, %v967_v16, %v1910_v60 }
  0xa5   : > { %v1918_v59 = vpop.permute.xlu0 %1917  ;;  %v986_v44 = vsel %vm983_vm9, %v977_v21, %v1924_v24  ;;  %v987_v40 = vsel %vm983_vm9, %v978_v43, %v1925_v23 }
  0xa6   : > { %v2431_v61 = vpop.permute.xlu1 %1932  ;;  %v1920_v63 = vunpack.i.h.bf16 %v1918_v59  ;;  %v1919_v1 = vunpack.i.l.bf16 %v1918_v59 }
  0xa7   : > { %v1935_v35 = vunpack.i.h.bf16 %v2431_v61  ;;  %v1934_v49 = vunpack.i.l.bf16 %v2431_v61 }
  0xa8   : > { %v984_v25 = vsel %vm983_vm9, %v975_v20, %v1919_v1  ;;  %v985_v2 = vsel %vm983_vm9, %v976_v18, %v1920_v63 }
  0xa9   : > { %v1928_v12 = vpop.permute.xlu0 %1927  ;;  %v935_v13 = vsel %vm929_vm3, %v374_v7, %v1935_v35  ;;  %v934_v62 = vsel %vm929_vm3, %v373_v6, %v1934_v49 }
  0xaa   : > { %v1930_v39 = vunpack.i.h.bf16 %v1928_v12  ;;  %v1929_v19 = vunpack.i.l.bf16 %v1928_v12  ;;  %v1943_v22 = vpop.permute.xlu1 %1942 }
  0xab   : > { %v1945_v48 = vunpack.i.h.bf16 %v1943_v22  ;;  %v1944_v50 = vunpack.i.l.bf16 %v1943_v22 }
  0xac   : > { %v993_v17 = vsel %vm992_vm10, %v984_v25, %v1929_v19  ;;  %v994_v30 = vsel %vm992_vm10, %v985_v2, %v1930_v39 }
  0xad   : > { %v1938_v34 = vpop.permute.xlu0 %1937  ;;  %v1001_v36 = vpack.c.bf16 %v994_v30, %v993_v17  ;;  %v937_v61 = vsel %vm929_vm3, %v376_v54, %v1945_v48  ;;  %v936_v63 = vsel %vm929_vm3, %v375_v51, %v1944_v50 }
  0xae   : > { %v1940_v37 = vunpack.i.h.bf16 %v1938_v34  ;;  %v1939_v38 = vunpack.i.l.bf16 %v1938_v34 }
  0xaf   : > { %1778 = vmatprep.mubr.msk.bf16.mxu0 %vm1048_vm11, %v1001_v36  ;;  %v1953_v41 = vpop.permute.xlu1 %1952 }
  0xb0   : > { %v995_v28 = vsel %vm992_vm10, %v986_v44, %v1939_v38  ;;  %v996_v14 = vsel %vm992_vm10, %v987_v40, %v1940_v37  ;;  %v1955_v55 = vunpack.i.h.bf16 %v1953_v41  ;;  %v1954_v56 = vunpack.i.l.bf16 %v1953_v41 }
  0xb1   : > { %v1002_v27 = vpack.c.bf16 %v996_v14, %v995_v28  ;;  %v1948_v42 = vpop.permute.xlu0 %1947 }
  0xb2   : > { %v1950_v59 = vunpack.i.h.bf16 %v1948_v42  ;;  %v1949_v8 = vunpack.i.l.bf16 %v1948_v42  ;;  %v945_v9 = vsel %vm938_vm4, %v936_v63, %v1954_v56  ;;  %v946_v10 = vsel %vm938_vm4, %v937_v61, %v1955_v55 }
  0xb3   : > { %1779 = vmatmul.mubr.msk.bf16.vlgmr.msra.gmra.mrb[0].mxu0 %vm1048_vm11, %v1002_v27  ;;  %v1963_v45 = vpop.permute.xlu1 %1962 }
  0xb4   : > { %v1965_v57 = vunpack.i.h.bf16 %v1963_v45  ;;  %v1964_v60 = vunpack.i.l.bf16 %v1963_v45  ;;  %v944_v58 = vsel %vm938_vm4, %v935_v13, %v1950_v59  ;;  %v943_v6 = vsel %vm938_vm4, %v934_v62, %v1949_v8 }
  0xb5   : > { %v1958_v46 = vpop.permute.xlu0 %1957 }
  0xb6   : > { %v1960_v1 = vunpack.i.h.bf16 %v1958_v46  ;;  %v1959_v4 = vunpack.i.l.bf16 %v1958_v46  ;;  %v954_v16 = vsel %vm947_vm5, %v945_v9, %v1964_v60  ;;  %v955_v54 = vsel %vm947_vm5, %v946_v10, %v1965_v57  ;;  %v1230_v60 = vld [vmem:[%s2649_s5] sm:$0xf] }
  0xb7   : > { %v1973_v47 = vpop.permute.xlu1 %1972  ;;  %1837 = vmatprep.subr.msk.bf16.mxu1 %vm1061_vm2, %v1230_v60  ;;  %v1707_v10 = vld [vmem:[%s2646_s2] ss:$0 sm:$0xff] }
  0xb8   : > { %v1975_v7 = vunpack.i.h.bf16 %v1973_v47  ;;  %v1974_v11 = vunpack.i.l.bf16 %v1973_v47  ;;  %v952_v20 = vsel %vm947_vm5, %v943_v6, %v1959_v4  ;;  %v953_v18 = vsel %vm947_vm5, %v944_v58, %v1960_v1 }
  0xb9   : > { %v1968_v53 = vpop.permute.xlu0 %1967 }
  0xba   : > { %v1970_v29 = vunpack.i.h.bf16 %v1968_v53  ;;  %v1969_v51 = vunpack.i.l.bf16 %v1968_v53  ;;  %v963_v23 = vsel %vm956_vm6, %v954_v16, %v1974_v11  ;;  %v964_v24 = vsel %vm956_vm6, %v955_v54, %v1975_v7 }
  0xbb   : > { %v1983_v52 = vpop.permute.xlu1 %1982 }
  0xbc   : > { %v1985_v31 = vunpack.i.h.bf16 %v1983_v52  ;;  %v1984_v12 = vunpack.i.l.bf16 %v1983_v52  ;;  %v961_v32 = vsel %vm956_vm6, %v952_v20, %v1969_v51  ;;  %v962_v34 = vsel %vm956_vm6, %v953_v18, %v1970_v29 }
  0xbd   : > { %v1978_v0 = vpop.permute.xlu0 %1977 }
  0xbe   : > { %v1980_v39 = vunpack.i.h.bf16 %v1978_v0  ;;  %v1979_v19 = vunpack.i.l.bf16 %v1978_v0  ;;  %v972_v36 = vsel %vm965_vm7, %v963_v23, %v1984_v12  ;;  %v973_v21 = vsel %vm965_vm7, %v964_v24, %v1985_v31 }
  0xbf   : > { %v1993_v5 = vpop.permute.xlu1 %1992  ;;  %v1313_v0 = vsel %vm1061_vm2, %v1230_v60, 0 }
  0xc0   : > { %v1995_v25 = vunpack.i.h.bf16 %v1993_v5  ;;  %v1994_v2 = vunpack.i.l.bf16 %v1993_v5  ;;  %v970_v43 = vsel %vm965_vm7, %v961_v32, %v1979_v19  ;;  %v971_v37 = vsel %vm965_vm7, %v962_v34, %v1980_v39  ;;  %1807 = vmatpush3.bf16.msra.mxu1 %v1313_v0 }
  0xc1   : > { %v1988_v33 = vpop.permute.xlu0 %1987 }
  0xc2   : > { %v1990_v3 = vunpack.i.h.bf16 %v1988_v33  ;;  %v1989_v26 = vunpack.i.l.bf16 %v1988_v33  ;;  %v981_v41 = vsel %vm974_vm8, %v972_v36, %v1994_v2  ;;  %v982_v28 = vsel %vm974_vm8, %v973_v21, %v1995_v25  ;;  %v1407_v21 = vld [vmem:[%s2652_s8] sm:$0x3] }
  0xc3   : > { %v2003_v22 = vpop.permute.xlu1 %2002  ;;  %1838 = vmatprep.subr.msk.bf16.mxu0 %vm1428_vm12, %v1407_v21 }
  0xc4   : > { %v2005_v17 = vunpack.i.h.bf16 %v2003_v22  ;;  %v2004_v30 = vunpack.i.l.bf16 %v2003_v22  ;;  %v979_v42 = vsel %vm974_vm8, %v970_v43, %v1989_v26  ;;  %v980_v45 = vsel %vm974_vm8, %v971_v37, %v1990_v3  ;;  %v1730_v37 = vld [vmem:[%s2651_s7] ss:$0 sm:$0xff] }
  0xc5   : > { %v1998_v15 = vpop.permute.xlu0 %1997  ;;  %v1430_v43 = vsel %vm1428_vm12, %v1407_v21, 0 }
  0xc6   : > { %v2000_v38 = vunpack.i.h.bf16 %v1998_v15  ;;  %v1999_v44 = vunpack.i.l.bf16 %v1998_v15  ;;  %v990_v46 = vsel %vm983_vm9, %v981_v41, %v2004_v30  ;;  %v991_v47 = vsel %vm983_vm9, %v982_v28, %v2005_v17  ;;  %1817 = vmatpush3.bf16.msra.mxu0 %v1430_v43 }
  0xc7   : > { %v2013_v40 = vpop.permute.xlu1 %2012 }
  0xc8   : > { %v2015_v14 = vunpack.i.h.bf16 %v2013_v40  ;;  %v2014_v27 = vunpack.i.l.bf16 %v2013_v40  ;;  %v988_v52 = vsel %vm983_vm9, %v979_v42, %v1999_v44  ;;  %v989_v55 = vsel %vm983_vm9, %v980_v45, %v2000_v38 }
  0xc9   : > { %v2008_v53 = vpop.permute.xlu0 %2007 }
  0xca   : > { %v999_v35 = vsel %vm992_vm10, %v990_v46, %v2014_v27  ;;  %v1000_v49 = vsel %vm992_vm10, %v991_v47, %v2015_v14  ;;  %v2010_v48 = vunpack.i.h.bf16 %v2008_v53  ;;  %v2009_v50 = vunpack.i.l.bf16 %v2008_v53 }
  0xcb   : > { %v1004_v56 = vpack.c.bf16 %v1000_v49, %v999_v35 }
  0xcc   : > { %v997_v59 = vsel %vm992_vm10, %v988_v52, %v2009_v50  ;;  %v998_v8 = vsel %vm992_vm10, %v989_v55, %v2010_v48 }
  0xcd   : > { %v1003_v57 = vpack.c.bf16 %v998_v8, %v997_v59 }
  0xcf   : > { %1782 = vmatprep.mubr.msk.bf16.mxu0 %vm1048_vm11, %v1003_v57 }
  0xd0   : > { %1783 = vmatmul.mubr.msk.bf16.gmra.mrb[4].mxu0 %vm1048_vm11, %v1004_v56 }
 0x127   : > { %v2510_v13 = vpop.f32.mrb[0].mxu1 }
 0x128   : > { %v2512_v62 = vpop.f32.mrb[1].mxu1 }
 0x129   : > { %v2514_v61 = vpop.f32.mrb[2].mxu1 }
 0x12a   : > { %v2516_v63 = vpop.f32.mrb[3].mxu1 }
 0x12f   : > { %v2518_v1 = vpop.f32.mrb[4].mxu1 }
 0x130   : > { %v2520_v4 = vpop.f32.mrb[5].mxu1 }
 0x131   : > { %v2522_v5 = vpop.f32.mrb[6].mxu1 }
 0x132   : > { %v2524_v9 = vpop.f32.mrb[7].mxu1 }
 0x186   : > { %v1780_v7 = vpop.f32.mrb[0].mxu0 }
 0x187   : > { %v1099_v11 = vpop.f32.mrb[1].mxu0  ;;  %v2531_v16 = vadd.f32 %v1780_v7, %v1707_v10 }
 0x188   : > { %v2529_v58 = vadd.f32 %v1707_v10, %v1099_v11  ;;  %v1781_v6 = vpop.f32.mrb[2].mxu0 }
 0x189   : > { %v2533_v54 = vadd.f32 %v1781_v6, %v1707_v10  ;;  %v1102_v33 = vpop.f32.mrb[3].mxu0  ;;  %v1132_v20 = vmax.f32 %v2531_v16, 0.0 }
 0x18a   : > { %v2535_v29 = vadd.f32 %v1707_v10, %v1102_v33  ;;  %v1130_v31 = vmax.f32 %v2529_v58, 0.0 }
 0x18b   : > { %v1133_v51 = vmax.f32 %v2533_v54, 0.0 }
 0x18c   : > { %v1131_v12 = vmax.f32 %v2535_v29, 0.0 }
 0x18d   : > { %v1227_v39 = vpack.c.bf16 %v1133_v51, %v1132_v20 }
 0x18e   : > { %v1226_v18 = vpack.c.bf16 %v1131_v12, %v1130_v31 }
 0x190   : > { %1808 = vmatprep.mubr.msk.bf16.mxu1 %vm929_vm3, %v1226_v18 }
 0x191   : > { %1809 = vmatmul.mubr.msk.bf16.vlgmr.msra.gmra.mrb[8].mxu1 %vm929_vm3, %v1227_v39 }
 0x1a3   : > { %v1784_v19 = vpop.f32.mrb[4].mxu0 }
 0x1a4   : > { %v1115_v22 = vpop.f32.mrb[5].mxu0  ;;  %v2553_v25 = vadd.f32 %v1784_v19, %v1707_v10 }
 0x1a5   : > { %v2551_v23 = vadd.f32 %v1707_v10, %v1115_v22  ;;  %v1785_v24 = vpop.f32.mrb[6].mxu0  ;;  %v1731_v22 = vld [vmem:[%s2653_s9] ss:$0 sm:$0xff] }
 0x1a6   : > { %v2555_v2 = vadd.f32 %v1785_v24, %v1707_v10  ;;  %v1118_v3 = vpop.f32.mrb[7].mxu0  ;;  %v1136_v32 = vmax.f32 %v2553_v25, 0.0 }
 0x1a7   : > { %v2557_v26 = vadd.f32 %v1707_v10, %v1118_v3  ;;  %v1134_v30 = vmax.f32 %v2551_v23, 0.0 }
 0x1a8   : > { %v1137_v17 = vmax.f32 %v2555_v2, 0.0 }
 0x1a9   : > { %v1135_v15 = vmax.f32 %v2557_v26, 0.0 }
 0x1aa   : > { %v1229_v36 = vpack.c.bf16 %v1137_v17, %v1136_v32 }
 0x1ab   : > { %v1228_v34 = vpack.c.bf16 %v1135_v15, %v1134_v30 }
 0x1ad   : > { %1812 = vmatprep.mubr.msk.bf16.mxu1 %vm929_vm3, %v1228_v34 }
 0x1ae   : > { %1813 = vmatmul.mubr.msk.bf16.gmra.mrb[12].mxu1 %vm929_vm3, %v1229_v36 }
 0x264   : > { %v1810_v38 = vpop.f32.mrb[8].mxu1 }
 0x265   : > { %v1389_v44 = vadd.f32 %v1810_v38, %v1730_v37  ;;  %v1349_v40 = vpop.f32.mrb[9].mxu1 }
 0x266   : > { %v1387_v41 = vadd.f32 %v1730_v37, %v1349_v40  ;;  %v1811_v28 = vpop.f32.mrb[10].mxu1 }
 0x267   : > { %v1390_v14 = vadd.f32 %v1811_v28, %v1730_v37  ;;  %v1352_v27 = vpop.f32.mrb[11].mxu1  ;;  %v1397_v45 = vmax.f32 %v1389_v44, 0.0 }
 0x268   : > { %v1388_v42 = vadd.f32 %v1730_v37, %v1352_v27  ;;  %v1395_v47 = vmax.f32 %v1387_v41, 0.0 }
 0x269   : > { %v1398_v46 = vmax.f32 %v1390_v14, 0.0 }
 0x26a   : > { %v1396_v53 = vmax.f32 %v1388_v42, 0.0 }
 0x26b   : > { %v1404_v35 = vpack.c.bf16 %v1398_v46, %v1397_v45 }
 0x26c   : > { %v1403_v49 = vpack.c.bf16 %v1396_v53, %v1395_v47 }
 0x26e   : > { %1818 = vmatprep.mubr.msk.bf16.mxu0 %vm1415_vm13, %v1403_v49 }
 0x26f   : > { %1819 = vmatmul.mubr.msk.bf16.vlgmr.msra.gmra.mrb[8].mxu0 %vm1415_vm13, %v1404_v35 }
 0x281   : > { %v1814_v48 = vpop.f32.mrb[12].mxu1 }
 0x282   : > { %v1393_v50 = vadd.f32 %v1814_v48, %v1730_v37  ;;  %v1365_v52 = vpop.f32.mrb[13].mxu1 }
 0x283   : > { %v1391_v55 = vadd.f32 %v1730_v37, %v1365_v52  ;;  %v1815_v56 = vpop.f32.mrb[14].mxu1 }
 0x284   : > { %v1394_v59 = vadd.f32 %v1815_v56, %v1730_v37  ;;  %v1368_v8 = vpop.f32.mrb[15].mxu1  ;;  %v1401_v60 = vmax.f32 %v1393_v50, 0.0 }
 0x285   : > { %v1392_v57 = vadd.f32 %v1730_v37, %v1368_v8  ;;  %v1399_v10 = vmax.f32 %v1391_v55, 0.0 }
 0x286   : > { %v1402_v0 = vmax.f32 %v1394_v59, 0.0 }
 0x287   : > { %v1400_v7 = vmax.f32 %v1392_v57, 0.0 }
 0x288   : > { %v1406_v11 = vpack.c.bf16 %v1402_v0, %v1401_v60 }
 0x289   : > { %v1405_v6 = vpack.c.bf16 %v1400_v7, %v1399_v10 }
 0x28b   : > { %1822 = vmatprep.mubr.msk.bf16.mxu0 %vm1415_vm13, %v1405_v6 }
 0x28c   : > { %1823 = vmatmul.mubr.msk.bf16.gmra.mrb[12].mxu0 %vm1415_vm13, %v1406_v11 }
 0x342   : > { %v1820_v33 = vpop.f32.mrb[8].mxu0 }
 0x343   : > { %v1466_v18 = vpop.f32.mrb[9].mxu0  ;;  %v1475_v24 = vadd.f32 %v1820_v33, %v1731_v22 }
 0x344   : > { %v1821_v39 = vpop.f32.mrb[10].mxu0  ;;  %v1467_v3 = vadd.f32 %v1731_v22, %v1466_v18 }
 0x345   : > { %v1469_v19 = vpop.f32.mrb[11].mxu0  ;;  %v1478_v36 = vadd.f32 %v1821_v39, %v1731_v22  ;;  %v1499_v40 = vsel %vm929_vm3, %v1475_v24, -inf }
 0x346   : > { %v1470_v37 = vadd.f32 %v1731_v22, %v1469_v19  ;;  %v1497_v27 = vsel %vm929_vm3, %v1467_v3, -inf }
 0x347   : > { %v1500_v47 = vsel %vm929_vm3, %v1478_v36, -inf }
 0x348   : > { %v1498_v49 = vsel %vm929_vm3, %v1470_v37, -inf }
 0x35f   : > { %v1824_v34 = vpop.f32.mrb[12].mxu0 }
 0x360   : > { %v1491_v21 = vadd.f32 %v1824_v34, %v1731_v22  ;;  %v1482_v43 = vpop.f32.mrb[13].mxu0 }
 0x361   : > { %v1483_v38 = vadd.f32 %v1731_v22, %v1482_v43  ;;  %v1825_v44 = vpop.f32.mrb[14].mxu0 }
 0x362   : > { %v1505_v41 = vsel %vm929_vm3, %v1491_v21, -inf  ;;  %v1494_v28 = vadd.f32 %v1825_v44, %v1731_v22  ;;  %v1485_v14 = vpop.f32.mrb[15].mxu0 }
 0x363   : > { %v1506_v42 = vmax.f32 %v1499_v40, %v1505_v41  ;;  %v1501_v45 = vsel %vm929_vm3, %v1483_v38, -inf  ;;  %v1486_v46 = vadd.f32 %v1731_v22, %v1485_v14 }
 0x364   : > { %v1502_v53 = vmax.f32 %v1497_v27, %v1501_v45  ;;  %v1507_v35 = vsel %vm929_vm3, %v1494_v28, -inf }
 0x365   : > { %v1508_v48 = vmax.f32 %v1500_v47, %v1507_v35  ;;  %v1503_v50 = vsel %vm929_vm3, %v1486_v46, -inf }
 0x366   : > { %v1504_v52 = vmax.f32 %v1498_v49, %v1503_v50 }
 0x367   : > { %v1510_v55 = vmax.f32 %v1506_v42, %v1508_v48 }
 0x368   : > { %v1509_v56 = vmax.f32 %v1502_v53, %v1504_v52 }
 0x36a   : > { %v1511_v59 = vmax.f32 %v1509_v56, %v1510_v55 }
 0x36c   : > { %v1512_v8 = vrot.slane %v1511_v59, 4 }
 0x36e   : > { %v1513_v57 = vmax.f32 %v1511_v59, %v1512_v8 }
 0x370   : > { %v1514_v60 = vrot.slane %v1513_v57, 2 }
 0x372   : > { %v1515_v0 = vmax.f32 %v1513_v57, %v1514_v60 }
 0x374   : > { %v1516_v10 = vrot.slane %v1515_v0, 1 }
 0x376   : > { %v1517_v7 = vmax.f32 %v1515_v0, %v1516_v10 }
 0x378   : > { %v1518_v11 = vsub.f32 %v1467_v3, %v1517_v7  ;;  %v1519_v6 = vsub.f32 %v1470_v37, %v1517_v7  ;;  %v1520_v33 = vsub.f32 %v1475_v24, %v1517_v7  ;;  %v1521_v18 = vsub.f32 %v1478_v36, %v1517_v7 }
 0x379   : > { %v1522_v39 = vsub.f32 %v1483_v38, %v1517_v7  ;;  %v1523_v19 = vsub.f32 %v1486_v46, %v1517_v7  ;;  %v1524_v22 = vsub.f32 %v1491_v21, %v1517_v7  ;;  %v1525_v34 = vsub.f32 %v1494_v28, %v1517_v7 }
 0x37a   : > { %v1526_v43 = vmul.f32 1.442695, %v1518_v11  ;;  %v1528_v44 = vmul.f32 1.442695, %v1519_v6  ;;  %v1530_v40 = vmul.f32 1.442695, %v1520_v33 }
 0x37b   : > { %v1532_v41 = vmul.f32 1.442695, %v1521_v18  ;;  %v1534_v14 = vmul.f32 1.442695, %v1522_v39  ;;  %v1536_v27 = vmul.f32 1.442695, %v1523_v19 }
 0x37c   : > { %2021 = vpow2.f32 %v1526_v43  ;;  %v1538_v42 = vmul.f32 1.442695, %v1524_v22  ;;  %v1540_v3 = vmul.f32 1.442695, %v1525_v34  ;;  %v1717_v19 = vld [vmem:[%s2648_s4] ss:$0 sm:$0xff] }
 0x37d   : > { %2023 = vpow2.f32 %v1528_v44  ;;  %v1204_v22 = vadd.f32 %v2510_v13, %v1717_v19  ;;  %v1196_v34 = vadd.f32 %v1717_v19, %v2512_v62  ;;  %v1207_v43 = vadd.f32 %v2514_v61, %v1717_v19 }
 0x37e   : > { %2025 = vpow2.f32 %v1530_v40  ;;  %v1199_v44 = vadd.f32 %v1717_v19, %v2516_v63 }
 0x37f   : > { %2027 = vpow2.f32 %v1532_v41  ;;  %v1220_v41 = vadd.f32 %v2518_v1, %v1717_v19 }
 0x380   : > { %2029 = vpow2.f32 %v1534_v14  ;;  %v1212_v14 = vadd.f32 %v1717_v19, %v2520_v4 }
 0x381   : > { %2031 = vpow2.f32 %v1536_v27  ;;  %v1223_v27 = vadd.f32 %v2522_v5, %v1717_v19 }
 0x382   : > { %2033 = vpow2.f32 %v1538_v42  ;;  %v1215_v42 = vadd.f32 %v1717_v19, %v2524_v9 }
 0x383   : > { %2035 = vpow2.f32 %v1540_v3 }
 0x386   : > { %v2022_v24 = vpop.eup %2021 }
 0x387   : > { %v2024_v36 = vpop.eup %2023  ;;  %v1542_v21 = vsel %vm929_vm3, %v2022_v24, 0.0 }
 0x388   : > { %v2026_v37 = vpop.eup %2025  ;;  %v1543_v38 = vsel %vm929_vm3, %v2024_v36, 0.0 }
 0x389   : > { %v2028_v28 = vpop.eup %2027  ;;  %v1544_v45 = vadd.f32 %v1543_v38, %v1542_v21  ;;  %v1545_v46 = vsel %vm929_vm3, %v2026_v37, 0.0 }
 0x38a   : > { %v2030_v47 = vpop.eup %2029  ;;  %v1547_v35 = vsel %vm929_vm3, %v2028_v28, 0.0 }
 0x38b   : > { %v1546_v53 = vadd.f32 %v1545_v46, %v1544_v45  ;;  %v2032_v49 = vpop.eup %2031  ;;  %v1549_v50 = vsel %vm929_vm3, %v2030_v47, 0.0 }
 0x38c   : > { %v2034_v52 = vpop.eup %2033  ;;  %v1551_v56 = vsel %vm929_vm3, %v2032_v49, 0.0 }
 0x38d   : > { %v1548_v48 = vadd.f32 %v1547_v35, %v1546_v53  ;;  %v2036_v59 = vpop.eup %2035  ;;  %v1553_v57 = vsel %vm929_vm3, %v2034_v52, 0.0 }
 0x38e   : > { %v1555_v0 = vsel %vm929_vm3, %v2036_v59, 0.0 }
 0x38f   : > { %v1550_v55 = vadd.f32 %v1549_v50, %v1548_v48 }
 0x391   : > { %v1552_v8 = vadd.f32 %v1551_v56, %v1550_v55 }
 0x393   : > { %v1554_v60 = vadd.f32 %v1553_v57, %v1552_v8 }
 0x395   : > { %v1556_v10 = vadd.f32 %v1555_v0, %v1554_v60 }
 0x397   : > { %v1557_v7 = vrot.slane %v1556_v10, 4 }
 0x399   : > { %v1558_v11 = vadd.f32 %v1557_v7, %v1556_v10 }
 0x39b   : > { %v1559_v6 = vrot.slane %v1558_v11, 2 }
 0x39d   : > { %v1560_v33 = vadd.f32 %v1559_v6, %v1558_v11 }
 0x39f   : > { %v1561_v18 = vrot.slane %v1560_v33, 1 }
 0x3a1   : > { %v1562_v39 = vadd.f32 %v1561_v18, %v1560_v33 }
 0x3a3   : > { %2037 = vrcp.f32 %v1562_v39 }
 0x3ad   : > { %v2038_v40 = vpop.eup %2037 }
 0x3ae   : > { %v1564_v3 = vmul.f32 %v2038_v40, %v2022_v24  ;;  %v1565_v21 = vmul.f32 %v2038_v40, %v2024_v36  ;;  %v1566_v38 = vmul.f32 %v2038_v40, %v2026_v37  ;;  %v1567_v13 = vmul.f32 %v2038_v40, %v2028_v28 }
 0x3af   : > { %v1568_v45 = vmul.f32 %v2038_v40, %v2030_v47  ;;  %v1569_v62 = vmul.f32 %v2038_v40, %v2032_v49  ;;  %v1570_v46 = vmul.f32 %v2038_v40, %v2034_v52  ;;  %v1571_v61 = vmul.f32 %v2038_v40, %v2036_v59 }
 0x3b0   : > { %v1572_v53 = vmul.f32 %v1564_v3, %v1196_v34  ;;  %v1573_v63 = vmul.f32 %v1565_v21, %v1199_v44  ;;  %v1574_v35 = vmul.f32 %v1566_v38, %v1204_v22  ;;  %v1575_v48 = vmul.f32 %v1567_v13, %v1207_v43 }
 0x3b1   : > { %v1576_v1 = vmul.f32 %v1568_v45, %v1212_v14  ;;  %v1577_v4 = vmul.f32 %v1569_v62, %v1215_v42  ;;  %v1578_v5 = vmul.f32 %v1570_v46, %v1220_v41  ;;  %v1579_v9 = vmul.f32 %v1571_v61, %v1223_v27 }
 0x3b2   : > { %v1580_v24 = vadd.f32 %v1572_v53, %v1130_v31  ;;  %v1581_v36 = vadd.f32 %v1573_v63, %v1131_v12  ;;  %v1582_v37 = vadd.f32 %v1574_v35, %v1132_v20  ;;  %v1583_v28 = vadd.f32 %v1575_v48, %v1133_v51 }
 0x3b3   : > { %v1584_v47 = vadd.f32 %v1576_v1, %v1134_v30  ;;  %v1585_v49 = vadd.f32 %v1577_v4, %v1135_v15  ;;  %v1586_v50 = vadd.f32 %v1578_v5, %v1136_v32  ;;  %v1587_v58 = vadd.f32 %v1579_v9, %v1137_v17 }
 0x3b4   : > { %1588 = vst.msk [vmem:[%s359_s20] sm:$0xff] %vm929_vm3, %v1580_v24  ;;  %1589 = vst.msk [vmem:[%s359_s20 + $0x8] sm:$0xff] %vm929_vm3, %v1581_v36 }
 0x3b5   : > { %1590 = vst.msk [vmem:[%s359_s20 + $0x10] sm:$0xff] %vm929_vm3, %v1582_v37  ;;  %1591 = vst.msk [vmem:[%s359_s20 + $0x18] sm:$0xff] %vm929_vm3, %v1583_v28 }
 0x3b6   : > { %1592 = vst.msk [vmem:[%s359_s20 + $0x20] sm:$0xff] %vm929_vm3, %v1584_v47  ;;  %1593 = vst.msk [vmem:[%s359_s20 + $0x28] sm:$0xff] %vm929_vm3, %v1585_v49 }
 0x3b7   : > { %1594 = vst.msk [vmem:[%s359_s20 + $0x30] sm:$0xff] %vm929_vm3, %v1586_v50  ;;  %1595 = vst.msk [vmem:[%s359_s20 + $0x38] sm:$0xff] %vm929_vm3, %v1587_v58 }
 0x3b8 PF: > { %s20_s13 = sadd.s32 1, %s2045_s13  }
 0x3b9   : > { %p17_p4 = scmp.ge.s32.totalorder %s20_s13, 4  }
 0x3bb   :  { %19 = sbr.rel (!%p17_p4) target bundleno = 1 (0x1), region = 92 }

</bundles_post_ra>
